<compile_context>
chip_gen: v5e
topology: v5e:2x2
jax: 0.10.0
libtpu: 0.0.40
codegen_flags: <defaults>
</compile_context>

<pallas_src>
import math
import functools

import jax
import jax.numpy as jnp
from jax.experimental import pallas as pl
from jax.experimental.pallas import tpu as pltpu

NEG_SLOPE = 0.01   # nn.LeakyReLU default
LN_EPS = 1e-5      # nn.LayerNorm default


# ----------------------------- small helpers (in-kernel) --------------------

def _leaky(x):
    return jnp.where(x >= 0.0, x, NEG_SLOPE * x)


def _layernorm(x, g, b):
    mu = jnp.mean(x, axis=-1, keepdims=True)
    xc = x - mu
    var = jnp.mean(xc * xc, axis=-1, keepdims=True)
    return xc * jax.lax.rsqrt(var + LN_EPS) * g + b


# ---------------------- the single fused forward kernel ---------------------
# grid = (B, nlayers); batch axis is "parallel", layer axis is "arbitrary".
# Per batch b the activation x (S, D) is carried across layers in VMEM scratch.

def _tf_fused_kernel(src_ref, pe_ref, mask_ref,
                     enc1_w_ref, enc1_b_ref, enc2_w_ref, enc2_b_ref,
                     wqkv_ref, bqkv_ref, wo_ref, bo_ref,
                     g1_ref, be1_ref, w1_ref, bf1_ref, w2_ref, bf2_ref,
                     g2_ref, be2_ref,
                     h1_w_ref, h1_b_ref, h2_w_ref, h2_b_ref,
                     l2a_w_ref, l2a_b_ref, l2b_w_ref, l2b_b_ref,
                     o_ref, x_sc, *, nhead, dff_chunk):
    l = pl.program_id(1)

    # ---- layer 0 prologue: encoder front (Linear->LeakyReLU->Linear) + PE ----
    @pl.when(l == 0)
    def _():
        h = jnp.dot(src_ref[...].astype(jnp.bfloat16), enc1_w_ref[...],
                    preferred_element_type=jnp.float32) + enc1_b_ref[...]
        h = _leaky(h)
        x0 = jnp.dot(h.astype(jnp.bfloat16), enc2_w_ref[...],
                     preferred_element_type=jnp.float32) + enc2_b_ref[...]
        x_sc[...] = x0 + pe_ref[...]          # PE row for this batch, bcast over S

    x = x_sc[...]                             # (S, D) f32 residual carry
    S, D = x.shape
    Dh = D // nhead
    scale = 1.0 / math.sqrt(Dh)

    # ---- multi-head self-attention (per batch; (S,S) causal mask) ----
    xb = x.astype(jnp.bfloat16)
    qkv = jnp.dot(xb, wqkv_ref[...], preferred_element_type=jnp.float32)
    qkv = qkv + bqkv_ref[...]                 # (S, 3D) f32
    qkvb = qkv.astype(jnp.bfloat16)           # single wide cast; cheap slices below
    attn = jnp.zeros((S, D), jnp.float32)
    for hd in range(nhead):
        q = qkvb[:, hd * Dh:(hd + 1) * Dh]
        k = qkvb[:, D + hd * Dh:D + (hd + 1) * Dh]
        v = qkvb[:, 2 * D + hd * Dh:2 * D + (hd + 1) * Dh]
        # q @ k^T without explicit transpose (contract last dims)
        s = jax.lax.dot_general(q, k, (((1,), (1,)), ((), ())),
                                preferred_element_type=jnp.float32)
        s = s * scale + mask_ref[...]
        mx = jnp.max(s, axis=-1, keepdims=True)
        p = jnp.exp(s - mx)
        p = p * pl.reciprocal(jnp.sum(p, axis=-1, keepdims=True), approx=True)
        o_h = jnp.dot(p.astype(jnp.bfloat16), v,
                      preferred_element_type=jnp.float32)
        # fold out_proj per head: concat(o_h) @ Wo == sum_h o_h @ Wo[h*Dh:...]
        attn = attn + jnp.dot(o_h.astype(jnp.bfloat16),
                              wo_ref[hd * Dh:(hd + 1) * Dh, :],
                              preferred_element_type=jnp.float32)
    attn = attn + bo_ref[...]

    x = _layernorm(x + attn, g1_ref[...], be1_ref[...])

    # ---- feed-forward (ReLU), chunked over dff; hidden never leaves VMEM ----
    xb = x.astype(jnp.bfloat16)
    dff = w1_ref.shape[1]
    ff = jnp.zeros((S, D), jnp.float32)
    for c in range(0, dff, dff_chunk):
        h1 = jnp.dot(xb, w1_ref[:, c:c + dff_chunk],
                     preferred_element_type=jnp.float32)
        h1 = jnp.maximum(h1 + bf1_ref[:, c:c + dff_chunk], 0.0)
        ff = ff + jnp.dot(h1.astype(jnp.bfloat16), w2_ref[c:c + dff_chunk, :],
                          preferred_element_type=jnp.float32)
    ff = ff + bf2_ref[...]

    x = _layernorm(x + ff, g2_ref[...], be2_ref[...])
    x_sc[...] = x

    # ---- last-layer epilogue: head MLP + linear2, all in VMEM/regs ----
    @pl.when(l == pl.num_programs(1) - 1)
    def _():
        # head: Linear(D, D//2) -> LeakyReLU -> Linear(D//2, 1)
        hh = jnp.dot(x.astype(jnp.bfloat16), h1_w_ref[...],
                     preferred_element_type=jnp.float32) + h1_b_ref[...]
        hh = _leaky(hh)
        y = jnp.dot(hh.astype(jnp.bfloat16), h2_w_ref[...],
                    preferred_element_type=jnp.float32) + h2_b_ref[...]   # (S, 1)
        # linear2 over the sequence axis for this batch: y^T @ W.
        # Done as broadcast-multiply + sublane reduce to avoid a (S,1)->(1,S)
        # relayout; S and HID2 are tiny so this is VPU/XLU filler.
        t = jnp.sum(y * l2a_w_ref[...].astype(jnp.float32),
                    axis=0, keepdims=True)                                # (1, HID2)
        t = _leaky(t + l2a_b_ref[...])
        out = jnp.dot(t.astype(jnp.bfloat16), l2b_w_ref[...],
                      preferred_element_type=jnp.float32) + l2b_b_ref[...]  # (1, OW)
        o_ref[...] = out


def tf_model_forward(params, src, srcmask, *, d_model, nhead, dff_chunk=1024):
    B, S, F = src.shape
    D = d_model
    L = params["wqkv"].shape[0]
    DFF = params["w1"].shape[2]
    H1 = params["enc1_w"].shape[1]
    HD2 = params["lin2a_w"].shape[1]
    OW = params["lin2b_w"].shape[1]
    dff_chunk = min(dff_chunk, DFF)
    assert DFF % dff_chunk == 0
    assert S == params["lin2a_w"].shape[0], "seq length must equal iw"

    # PositionalEncoding: x + pe[:x.size(0)]  (pe indexed by the BATCH axis,
    # broadcast over seq — faithful to the reference GGJ.py, which calls
    # pos_encoder on a batch-first tensor).  Dropout = identity (eval mode).
    pe_rows = params["pe"][:B]                      # (B, 1, D)

    const2 = lambda shape: pl.BlockSpec(shape, lambda b, l: (0, 0))
    perB3 = lambda shape: pl.BlockSpec((None,) + shape, lambda b, l: (b, 0, 0))
    perL3 = lambda shape: pl.BlockSpec((None,) + shape, lambda b, l: (l, 0, 0))

    kernel = functools.partial(_tf_fused_kernel, nhead=nhead, dff_chunk=dff_chunk)

    out = pl.pallas_call(
        kernel,
        out_shape=jax.ShapeDtypeStruct((B, 1, OW), jnp.float32),
        grid=(B, L),
        in_specs=[
            perB3((S, F)),                           # src (per batch)
            perB3((1, D)),                           # positional-enc row (per batch)
            const2((S, S)),                          # causal mask (additive, -inf)
            const2((F, H1)), const2((1, H1)),        # encoder front 1
            const2((H1, D)), const2((1, D)),         # encoder front 2
            perL3((D, 3 * D)), perL3((1, 3 * D)),    # attn in_proj
            perL3((D, D)), perL3((1, D)),            # attn out_proj
            perL3((1, D)), perL3((1, D)),            # ln1 gamma/beta
            perL3((D, DFF)), perL3((1, DFF)),        # ff1
            perL3((DFF, D)), perL3((1, D)),          # ff2
            perL3((1, D)), perL3((1, D)),            # ln2 gamma/beta
            const2((D, D // 2)), const2((1, D // 2)),  # head 1
            const2((D // 2, 1)), const2((1, 1)),       # head 2
            const2((S, HD2)), const2((1, HD2)),        # linear2 a
            const2((HD2, OW)), const2((1, OW)),        # linear2 b
        ],
        out_specs=pl.BlockSpec((None, 1, OW), lambda b, l: (b, 0, 0)),
        scratch_shapes=[pltpu.VMEM((S, D), jnp.float32)],
        compiler_params=pltpu.CompilerParams(
            dimension_semantics=("parallel", "arbitrary"),  # batch ∥, layers seq.
            vmem_limit_bytes=32 * 1024 * 1024),             # same budget on all gens
    )(src, pe_rows, srcmask,
      params["enc1_w"], params["enc1_b"], params["enc2_w"], params["enc2_b"],
      params["wqkv"], params["bqkv"], params["wo"], params["bo"],
      params["ln1_g"], params["ln1_b"], params["w1"], params["bf1"],
      params["w2"], params["bf2"], params["ln2_g"], params["ln2_b"],
      params["head1_w"], params["head1_b"], params["head2_w"], params["head2_b"],
      params["lin2a_w"], params["lin2a_b"], params["lin2b_w"], params["lin2b_b"])

    return out.reshape(B, OW)


# ----------------------------- model glue ----------------------------------

def make_positional_encoding(max_len, d_model):
    position = jnp.arange(max_len, dtype=jnp.float32)[:, None]
    div_term = jnp.exp(jnp.arange(0, d_model, 2, dtype=jnp.float32)
                       * (-math.log(10000.0) / d_model))
    pe = jnp.zeros((max_len, d_model), jnp.float32)
    pe = pe.at[:, 0::2].set(jnp.sin(position * div_term))
    pe = pe.at[:, 1::2].set(jnp.cos(position * div_term))
    return pe[:, None, :]                              # (max_len, 1, d_model)


def generate_square_subsequent_mask(sz):
    allowed = jnp.tril(jnp.ones((sz, sz), jnp.float32))  # triu().transpose()
    return jnp.where(allowed == 1.0, 0.0, -jnp.inf).astype(jnp.float32)


def init_params(key, num_feat, iw, ow, d_model, nhead, nlayers, dff):
    keys = iter(jax.random.split(key, 64))

    def dense(k_in, n_out):
        kw, kb = jax.random.split(next(keys))
        bound = 1.0 / math.sqrt(k_in)
        w = jax.random.uniform(kw, (k_in, n_out), jnp.float32, -bound, bound)
        b = jax.random.uniform(kb, (n_out,), jnp.float32, -bound, bound)
        return w.astype(jnp.bfloat16), b.reshape(1, n_out)   # bf16 W, f32 b

    p = {}
    p["enc1_w"], p["enc1_b"] = dense(num_feat, d_model // 2)
    p["enc2_w"], p["enc2_b"] = dense(d_model // 2, d_model)
    p["head1_w"], p["head1_b"] = dense(d_model, d_model // 2)
    p["head2_w"], p["head2_b"] = dense(d_model // 2, 1)
    hid2 = (iw + ow) // 2
    p["lin2a_w"], p["lin2a_b"] = dense(iw, hid2)
    p["lin2b_w"], p["lin2b_b"] = dense(hid2, ow)
    p["pe"] = make_positional_encoding(64, d_model)

    stacks = {k: [] for k in ["wqkv", "bqkv", "wo", "bo",
                              "w1", "bf1", "w2", "bf2"]}
    for _ in range(nlayers):
        w, b = dense(d_model, 3 * d_model)
        stacks["wqkv"].append(w); stacks["bqkv"].append(b)
        w, b = dense(d_model, d_model)
        stacks["wo"].append(w); stacks["bo"].append(b)
        w, b = dense(d_model, dff)
        stacks["w1"].append(w); stacks["bf1"].append(b)
        w, b = dense(dff, d_model)
        stacks["w2"].append(w); stacks["bf2"].append(b)
    for k, v in stacks.items():
        p[k] = jnp.stack(v)                               # (L, ...)
    p["ln1_g"] = jnp.ones((nlayers, 1, d_model), jnp.float32)
    p["ln1_b"] = jnp.zeros((nlayers, 1, d_model), jnp.float32)
    p["ln2_g"] = jnp.ones((nlayers, 1, d_model), jnp.float32)
    p["ln2_b"] = jnp.zeros((nlayers, 1, d_model), jnp.float32)
    return p


# ------------------------------- main ---------------------------------------

if __name__ == "__main__":
    # Small shapes consistent with the forward pass (seq length must equal iw).
    B, IW, OW, NUM_FEAT = 2, 16, 8, 4
    D_MODEL, NHEAD, NLAYERS = 64, 2, 2
    DFF = 2048   # nn.TransformerEncoderLayer default dim_feedforward

    key = jax.random.PRNGKey(0)
    kp, kx = jax.random.split(key)

    params = init_params(kp, NUM_FEAT, IW, OW, D_MODEL, NHEAD, NLAYERS, DFF)
    src = jax.random.normal(kx, (B, IW, NUM_FEAT), jnp.float32)
    srcmask = generate_square_subsequent_mask(IW)

    fwd = jax.jit(functools.partial(tf_model_forward, d_model=D_MODEL, nhead=NHEAD))
    out = fwd(params, src, srcmask)
    out = jax.block_until_ready(out)
    assert out.shape == (B, OW), out.shape
    assert bool(jnp.all(jnp.isfinite(out)))
    print("KERNEL_OK")
</pallas_src>

<mosaic_0001>
module attributes {stable_mosaic.version = 11 : i64} {
  func.func @_tf_fused_kernel(%arg0: i32, %arg1: i32, %arg2: memref<1x16x4xf32, #tpu.memory_space<vmem>>, %arg3: memref<1x1x64xf32, #tpu.memory_space<vmem>>, %arg4: memref<16x16xf32, #tpu.memory_space<vmem>>, %arg5: memref<4x32xbf16, #tpu.memory_space<vmem>>, %arg6: memref<1x32xf32, #tpu.memory_space<vmem>>, %arg7: memref<32x64xbf16, #tpu.memory_space<vmem>>, %arg8: memref<1x64xf32, #tpu.memory_space<vmem>>, %arg9: memref<1x64x192xbf16, #tpu.memory_space<vmem>>, %arg10: memref<1x1x192xf32, #tpu.memory_space<vmem>>, %arg11: memref<1x64x64xbf16, #tpu.memory_space<vmem>>, %arg12: memref<1x1x64xf32, #tpu.memory_space<vmem>>, %arg13: memref<1x1x64xf32, #tpu.memory_space<vmem>>, %arg14: memref<1x1x64xf32, #tpu.memory_space<vmem>>, %arg15: memref<1x64x2048xbf16, #tpu.memory_space<vmem>>, %arg16: memref<1x1x2048xf32, #tpu.memory_space<vmem>>, %arg17: memref<1x2048x64xbf16, #tpu.memory_space<vmem>>, %arg18: memref<1x1x64xf32, #tpu.memory_space<vmem>>, %arg19: memref<1x1x64xf32, #tpu.memory_space<vmem>>, %arg20: memref<1x1x64xf32, #tpu.memory_space<vmem>>, %arg21: memref<64x32xbf16, #tpu.memory_space<vmem>>, %arg22: memref<1x32xf32, #tpu.memory_space<vmem>>, %arg23: memref<32x1xbf16, #tpu.memory_space<vmem>>, %arg24: memref<1x1xf32, #tpu.memory_space<vmem>>, %arg25: memref<16x12xbf16, #tpu.memory_space<vmem>>, %arg26: memref<1x12xf32, #tpu.memory_space<vmem>>, %arg27: memref<12x8xbf16, #tpu.memory_space<vmem>>, %arg28: memref<1x8xf32, #tpu.memory_space<vmem>>, %arg29: memref<1x1x8xf32, #tpu.memory_space<vmem>>, %arg30: memref<16x64xf32, #tpu.memory_space<vmem>>) attributes {dimension_semantics = [#tpu.dimension_semantics<parallel>, #tpu.dimension_semantics<arbitrary>], iteration_bounds = array<i64: 2, 2>, scalar_prefetch = 0 : i64, scratch_operands = 1 : i64, tpu.core_type = #tpu.core_type<tc>, window_params = [{transform_indices = @transform_0, window_bounds = array<i64: 1, 16, 4>}, {transform_indices = @transform_1, window_bounds = array<i64: 1, 1, 64>}, {pipeline_mode = #tpu.pipeline_mode<synchronous>, transform_indices = @transform_2, window_bounds = array<i64: 16, 16>}, {pipeline_mode = #tpu.pipeline_mode<synchronous>, transform_indices = @transform_3, window_bounds = array<i64: 4, 32>}, {pipeline_mode = #tpu.pipeline_mode<synchronous>, transform_indices = @transform_4, window_bounds = array<i64: 1, 32>}, {pipeline_mode = #tpu.pipeline_mode<synchronous>, transform_indices = @transform_5, window_bounds = array<i64: 32, 64>}, {pipeline_mode = #tpu.pipeline_mode<synchronous>, transform_indices = @transform_6, window_bounds = array<i64: 1, 64>}, {transform_indices = @transform_7, window_bounds = array<i64: 1, 64, 192>}, {transform_indices = @transform_8, window_bounds = array<i64: 1, 1, 192>}, {transform_indices = @transform_9, window_bounds = array<i64: 1, 64, 64>}, {transform_indices = @transform_10, window_bounds = array<i64: 1, 1, 64>}, {transform_indices = @transform_11, window_bounds = array<i64: 1, 1, 64>}, {transform_indices = @transform_12, window_bounds = array<i64: 1, 1, 64>}, {transform_indices = @transform_13, window_bounds = array<i64: 1, 64, 2048>}, {transform_indices = @transform_14, window_bounds = array<i64: 1, 1, 2048>}, {transform_indices = @transform_15, window_bounds = array<i64: 1, 2048, 64>}, {transform_indices = @transform_16, window_bounds = array<i64: 1, 1, 64>}, {transform_indices = @transform_17, window_bounds = array<i64: 1, 1, 64>}, {transform_indices = @transform_18, window_bounds = array<i64: 1, 1, 64>}, {pipeline_mode = #tpu.pipeline_mode<synchronous>, transform_indices = @transform_19, window_bounds = array<i64: 64, 32>}, {pipeline_mode = #tpu.pipeline_mode<synchronous>, transform_indices = @transform_20, window_bounds = array<i64: 1, 32>}, {pipeline_mode = #tpu.pipeline_mode<synchronous>, transform_indices = @transform_21, window_bounds = array<i64: 32, 1>}, {pipeline_mode = #tpu.pipeline_mode<synchronous>, transform_indices = @transform_22, window_bounds = array<i64: 1, 1>}, {pipeline_mode = #tpu.pipeline_mode<synchronous>, transform_indices = @transform_23, window_bounds = array<i64: 16, 12>}, {pipeline_mode = #tpu.pipeline_mode<synchronous>, transform_indices = @transform_24, window_bounds = array<i64: 1, 12>}, {pipeline_mode = #tpu.pipeline_mode<synchronous>, transform_indices = @transform_25, window_bounds = array<i64: 12, 8>}, {pipeline_mode = #tpu.pipeline_mode<synchronous>, transform_indices = @transform_26, window_bounds = array<i64: 1, 8>}, {transform_indices = @transform_27, window_bounds = array<i64: 1, 1, 8>}]} {
    %c0_i32 = arith.constant 0 : i32
    %0 = arith.cmpi eq, %arg1, %c0_i32 : i32
    %1 = arith.extui %0 : i1 to i32
    %c0_i32_0 = arith.constant 0 : i32
    %2 = arith.cmpi ne, %1, %c0_i32_0 : i32
    scf.if %2 {
      %c0_85 = arith.constant 0 : index
      %c0_86 = arith.constant 0 : index
      %c0_87 = arith.constant 0 : index
      %156 = vector.load %arg2[%c0_85, %c0_86, %c0_87] : memref<1x16x4xf32, #tpu.memory_space<vmem>>, vector<1x16x4xf32>
      %157 = vector.shape_cast %156 : vector<1x16x4xf32> to vector<16x4xf32>
      %158 = arith.truncf %157 : vector<16x4xf32> to vector<16x4xbf16>
      %c0_88 = arith.constant 0 : index
      %c0_89 = arith.constant 0 : index
      %159 = vector.load %arg5[%c0_88, %c0_89] : memref<4x32xbf16, #tpu.memory_space<vmem>>, vector<4x32xbf16>
      %cst_90 = arith.constant dense<0.000000e+00> : vector<16x32xf32>
      %160 = tpu.matmul %158, %159, %cst_90 {dimension_numbers = #tpu.dot_dimension_numbers<[1], [0], [0], [1], [0, 0, 1, 1], [], []>} : vector<16x4xbf16>, vector<4x32xbf16>, vector<16x32xf32> -> vector<16x32xf32>
      %c0_91 = arith.constant 0 : index
      %c0_92 = arith.constant 0 : index
      %161 = vector.load %arg6[%c0_91, %c0_92] : memref<1x32xf32, #tpu.memory_space<vmem>>, vector<1x32xf32>
      %162 = vector.broadcast %161 : vector<1x32xf32> to vector<16x32xf32>
      %163 = arith.addf %160, %162 : vector<16x32xf32>
      %cst_93 = arith.constant 0.000000e+00 : f32
      %164 = vector.broadcast %cst_93 : f32 to vector<16x32xf32>
      %165 = arith.cmpf oge, %163, %164 : vector<16x32xf32>
      %cst_94 = arith.constant 0.00999999977 : f32
      %166 = vector.broadcast %cst_94 : f32 to vector<16x32xf32>
      %167 = arith.mulf %166, %163 : vector<16x32xf32>
      %168 = arith.select %165, %163, %167 : vector<16x32xi1>, vector<16x32xf32>
      %169 = arith.truncf %168 : vector<16x32xf32> to vector<16x32xbf16>
      %c0_95 = arith.constant 0 : index
      %c0_96 = arith.constant 0 : index
      %170 = vector.load %arg7[%c0_95, %c0_96] : memref<32x64xbf16, #tpu.memory_space<vmem>>, vector<32x64xbf16>
      %cst_97 = arith.constant dense<0.000000e+00> : vector<16x64xf32>
      %171 = tpu.matmul %169, %170, %cst_97 {dimension_numbers = #tpu.dot_dimension_numbers<[1], [0], [0], [1], [0, 0, 1, 1], [], []>} : vector<16x32xbf16>, vector<32x64xbf16>, vector<16x64xf32> -> vector<16x64xf32>
      %c0_98 = arith.constant 0 : index
      %c0_99 = arith.constant 0 : index
      %172 = vector.load %arg8[%c0_98, %c0_99] : memref<1x64xf32, #tpu.memory_space<vmem>>, vector<1x64xf32>
      %173 = vector.broadcast %172 : vector<1x64xf32> to vector<16x64xf32>
      %174 = arith.addf %171, %173 : vector<16x64xf32>
      %c0_100 = arith.constant 0 : index
      %c0_101 = arith.constant 0 : index
      %c0_102 = arith.constant 0 : index
      %175 = vector.load %arg3[%c0_100, %c0_101, %c0_102] : memref<1x1x64xf32, #tpu.memory_space<vmem>>, vector<1x1x64xf32>
      %176 = vector.shape_cast %175 : vector<1x1x64xf32> to vector<1x64xf32>
      %177 = vector.broadcast %176 : vector<1x64xf32> to vector<16x64xf32>
      %178 = arith.addf %174, %177 : vector<16x64xf32>
      %c0_103 = arith.constant 0 : index
      %c0_104 = arith.constant 0 : index
      %179 = vector.load %arg30[%c0_103, %c0_104] : memref<16x64xf32, #tpu.memory_space<vmem>>, vector<16x64xf32>
      tpu.vector_store %arg30[%c0_103, %c0_104], %178 {strides = array<i32>} : memref<16x64xf32, #tpu.memory_space<vmem>>, vector<16x64xf32>,
    } else {
    }
    %c0 = arith.constant 0 : index
    %c0_1 = arith.constant 0 : index
    %3 = vector.load %arg30[%c0, %c0_1] : memref<16x64xf32, #tpu.memory_space<vmem>>, vector<16x64xf32>
    %4 = arith.truncf %3 : vector<16x64xf32> to vector<16x64xbf16>
    %c0_2 = arith.constant 0 : index
    %c0_3 = arith.constant 0 : index
    %c0_4 = arith.constant 0 : index
    %5 = vector.load %arg9[%c0_2, %c0_3, %c0_4] : memref<1x64x192xbf16, #tpu.memory_space<vmem>>, vector<1x64x192xbf16>
    %6 = vector.shape_cast %5 : vector<1x64x192xbf16> to vector<64x192xbf16>
    %cst = arith.constant dense<0.000000e+00> : vector<16x192xf32>
    %7 = tpu.matmul %4, %6, %cst {dimension_numbers = #tpu.dot_dimension_numbers<[1], [0], [0], [1], [0, 0, 1, 1], [], []>} : vector<16x64xbf16>, vector<64x192xbf16>, vector<16x192xf32> -> vector<16x192xf32>
    %c0_5 = arith.constant 0 : index
    %c0_6 = arith.constant 0 : index
    %c0_7 = arith.constant 0 : index
    %8 = vector.load %arg10[%c0_5, %c0_6, %c0_7] : memref<1x1x192xf32, #tpu.memory_space<vmem>>, vector<1x1x192xf32>
    %9 = vector.shape_cast %8 : vector<1x1x192xf32> to vector<1x192xf32>
    %10 = vector.broadcast %9 : vector<1x192xf32> to vector<16x192xf32>
    %11 = arith.addf %7, %10 : vector<16x192xf32>
    %12 = arith.truncf %11 : vector<16x192xf32> to vector<16x192xbf16>
    %cst_8 = arith.constant 0.000000e+00 : f32
    %13 = vector.broadcast %cst_8 : f32 to vector<16x64xf32>
    %14 = vector.extract_strided_slice %12 {offsets = [0, 0], sizes = [16, 32], strides = [1, 1]} : vector<16x192xbf16> to vector<16x32xbf16>
    %15 = vector.extract_strided_slice %12 {offsets = [0, 64], sizes = [16, 32], strides = [1, 1]} : vector<16x192xbf16> to vector<16x32xbf16>
    %16 = vector.extract_strided_slice %12 {offsets = [0, 128], sizes = [16, 32], strides = [1, 1]} : vector<16x192xbf16> to vector<16x32xbf16>
    %cst_9 = arith.constant dense<0.000000e+00> : vector<16x16xf32>
    %17 = tpu.matmul %14, %15, %cst_9 {dimension_numbers = #tpu.dot_dimension_numbers<[1], [1], [0], [0], [0, 0, 1, 0], [], []>} : vector<16x32xbf16>, vector<16x32xbf16>, vector<16x16xf32> -> vector<16x16xf32>
    %cst_10 = arith.constant 0.176776692 : f32
    %18 = vector.broadcast %cst_10 : f32 to vector<16x16xf32>
    %19 = arith.mulf %17, %18 : vector<16x16xf32>
    %c0_11 = arith.constant 0 : index
    %c0_12 = arith.constant 0 : index
    %20 = vector.load %arg4[%c0_11, %c0_12] : memref<16x16xf32, #tpu.memory_space<vmem>>, vector<16x16xf32>
    %21 = arith.addf %19, %20 : vector<16x16xf32>
    %cst_13 = arith.constant dense<0xFF800000> : vector<16xf32>
    %22 = vector.multi_reduction <maximumf>, %21, %cst_13 [1] : vector<16x16xf32> to vector<16xf32>
    %23 = vector.shape_cast %22 : vector<16xf32> to vector<16x1xf32>
    %24 = vector.broadcast %23 : vector<16x1xf32> to vector<16x16xf32>
    %25 = arith.subf %21, %24 : vector<16x16xf32>
    %26 = math.exp %25 : vector<16x16xf32>
    %cst_14 = arith.constant dense<0.000000e+00> : vector<16xf32>
    %27 = vector.multi_reduction <add>, %26, %cst_14 [1] : vector<16x16xf32> to vector<16xf32>
    %28 = vector.shape_cast %27 : vector<16xf32> to vector<16x1xf32>
    %29 = tpu.reciprocal %28 {approx = true} : vector<16x1xf32> -> vector<16x1xf32>
    %30 = vector.broadcast %29 : vector<16x1xf32> to vector<16x16xf32>
    %31 = arith.mulf %26, %30 : vector<16x16xf32>
    %32 = arith.truncf %31 : vector<16x16xf32> to vector<16x16xbf16>
    %cst_15 = arith.constant dense<0.000000e+00> : vector<16x32xf32>
    %33 = tpu.matmul %32, %16, %cst_15 {dimension_numbers = #tpu.dot_dimension_numbers<[1], [0], [0], [1], [0, 0, 1, 1], [], []>} : vector<16x16xbf16>, vector<16x32xbf16>, vector<16x32xf32> -> vector<16x32xf32>
    %34 = arith.truncf %33 : vector<16x32xf32> to vector<16x32xbf16>
    %c0_16 = arith.constant 0 : index
    %c0_17 = arith.constant 0 : index
    %c0_18 = arith.constant 0 : index
    %35 = vector.load %arg11[%c0_16, %c0_17, %c0_18] : memref<1x64x64xbf16, #tpu.memory_space<vmem>>, vector<1x32x64xbf16>
    %36 = vector.shape_cast %35 : vector<1x32x64xbf16> to vector<32x64xbf16>
    %cst_19 = arith.constant dense<0.000000e+00> : vector<16x64xf32>
    %37 = tpu.matmul %34, %36, %cst_19 {dimension_numbers = #tpu.dot_dimension_numbers<[1], [0], [0], [1], [0, 0, 1, 1], [], []>} : vector<16x32xbf16>, vector<32x64xbf16>, vector<16x64xf32> -> vector<16x64xf32>
    %38 = arith.addf %13, %37 : vector<16x64xf32>
    %39 = vector.extract_strided_slice %12 {offsets = [0, 32], sizes = [16, 32], strides = [1, 1]} : vector<16x192xbf16> to vector<16x32xbf16>
    %40 = vector.extract_strided_slice %12 {offsets = [0, 96], sizes = [16, 32], strides = [1, 1]} : vector<16x192xbf16> to vector<16x32xbf16>
    %41 = vector.extract_strided_slice %12 {offsets = [0, 160], sizes = [16, 32], strides = [1, 1]} : vector<16x192xbf16> to vector<16x32xbf16>
    %cst_20 = arith.constant dense<0.000000e+00> : vector<16x16xf32>
    %42 = tpu.matmul %39, %40, %cst_20 {dimension_numbers = #tpu.dot_dimension_numbers<[1], [1], [0], [0], [0, 0, 1, 0], [], []>} : vector<16x32xbf16>, vector<16x32xbf16>, vector<16x16xf32> -> vector<16x16xf32>
    %cst_21 = arith.constant 0.176776692 : f32
    %43 = vector.broadcast %cst_21 : f32 to vector<16x16xf32>
    %44 = arith.mulf %42, %43 : vector<16x16xf32>
    %c0_22 = arith.constant 0 : index
    %c0_23 = arith.constant 0 : index
    %45 = vector.load %arg4[%c0_22, %c0_23] : memref<16x16xf32, #tpu.memory_space<vmem>>, vector<16x16xf32>
    %46 = arith.addf %44, %45 : vector<16x16xf32>
    %cst_24 = arith.constant dense<0xFF800000> : vector<16xf32>
    %47 = vector.multi_reduction <maximumf>, %46, %cst_24 [1] : vector<16x16xf32> to vector<16xf32>
    %48 = vector.shape_cast %47 : vector<16xf32> to vector<16x1xf32>
    %49 = vector.broadcast %48 : vector<16x1xf32> to vector<16x16xf32>
    %50 = arith.subf %46, %49 : vector<16x16xf32>
    %51 = math.exp %50 : vector<16x16xf32>
    %cst_25 = arith.constant dense<0.000000e+00> : vector<16xf32>
    %52 = vector.multi_reduction <add>, %51, %cst_25 [1] : vector<16x16xf32> to vector<16xf32>
    %53 = vector.shape_cast %52 : vector<16xf32> to vector<16x1xf32>
    %54 = tpu.reciprocal %53 {approx = true} : vector<16x1xf32> -> vector<16x1xf32>
    %55 = vector.broadcast %54 : vector<16x1xf32> to vector<16x16xf32>
    %56 = arith.mulf %51, %55 : vector<16x16xf32>
    %57 = arith.truncf %56 : vector<16x16xf32> to vector<16x16xbf16>
    %cst_26 = arith.constant dense<0.000000e+00> : vector<16x32xf32>
    %58 = tpu.matmul %57, %41, %cst_26 {dimension_numbers = #tpu.dot_dimension_numbers<[1], [0], [0], [1], [0, 0, 1, 1], [], []>} : vector<16x16xbf16>, vector<16x32xbf16>, vector<16x32xf32> -> vector<16x32xf32>
    %59 = arith.truncf %58 : vector<16x32xf32> to vector<16x32xbf16>
    %c0_27 = arith.constant 0 : index
    %c32 = arith.constant 32 : index
    %c0_28 = arith.constant 0 : index
    %60 = vector.load %arg11[%c0_27, %c32, %c0_28] : memref<1x64x64xbf16, #tpu.memory_space<vmem>>, vector<1x32x64xbf16>
    %61 = vector.shape_cast %60 : vector<1x32x64xbf16> to vector<32x64xbf16>
    %cst_29 = arith.constant dense<0.000000e+00> : vector<16x64xf32>
    %62 = tpu.matmul %59, %61, %cst_29 {dimension_numbers = #tpu.dot_dimension_numbers<[1], [0], [0], [1], [0, 0, 1, 1], [], []>} : vector<16x32xbf16>, vector<32x64xbf16>, vector<16x64xf32> -> vector<16x64xf32>
    %63 = arith.addf %38, %62 : vector<16x64xf32>
    %c0_30 = arith.constant 0 : index
    %c0_31 = arith.constant 0 : index
    %c0_32 = arith.constant 0 : index
    %64 = vector.load %arg12[%c0_30, %c0_31, %c0_32] : memref<1x1x64xf32, #tpu.memory_space<vmem>>, vector<1x1x64xf32>
    %65 = vector.shape_cast %64 : vector<1x1x64xf32> to vector<1x64xf32>
    %66 = vector.broadcast %65 : vector<1x64xf32> to vector<16x64xf32>
    %67 = arith.addf %63, %66 : vector<16x64xf32>
    %68 = arith.addf %3, %67 : vector<16x64xf32>
    %c0_33 = arith.constant 0 : index
    %c0_34 = arith.constant 0 : index
    %c0_35 = arith.constant 0 : index
    %69 = vector.load %arg13[%c0_33, %c0_34, %c0_35] : memref<1x1x64xf32, #tpu.memory_space<vmem>>, vector<1x1x64xf32>
    %70 = vector.shape_cast %69 : vector<1x1x64xf32> to vector<1x64xf32>
    %c0_36 = arith.constant 0 : index
    %c0_37 = arith.constant 0 : index
    %c0_38 = arith.constant 0 : index
    %71 = vector.load %arg14[%c0_36, %c0_37, %c0_38] : memref<1x1x64xf32, #tpu.memory_space<vmem>>, vector<1x1x64xf32>
    %72 = vector.shape_cast %71 : vector<1x1x64xf32> to vector<1x64xf32>
    %cst_39 = arith.constant dense<0.000000e+00> : vector<16xf32>
    %73 = vector.multi_reduction <add>, %68, %cst_39 [1] : vector<16x64xf32> to vector<16xf32>
    %74 = vector.shape_cast %73 : vector<16xf32> to vector<16x1xf32>
    %cst_40 = arith.constant 6.400000e+01 : f32
    %75 = vector.broadcast %cst_40 : f32 to vector<16x1xf32>
    %76 = arith.divf %74, %75 : vector<16x1xf32>
    %77 = vector.broadcast %76 : vector<16x1xf32> to vector<16x64xf32>
    %78 = arith.subf %68, %77 : vector<16x64xf32>
    %79 = arith.mulf %78, %78 : vector<16x64xf32>
    %cst_41 = arith.constant dense<0.000000e+00> : vector<16xf32>
    %80 = vector.multi_reduction <add>, %79, %cst_41 [1] : vector<16x64xf32> to vector<16xf32>
    %81 = vector.shape_cast %80 : vector<16xf32> to vector<16x1xf32>
    %cst_42 = arith.constant 6.400000e+01 : f32
    %82 = vector.broadcast %cst_42 : f32 to vector<16x1xf32>
    %83 = arith.divf %81, %82 : vector<16x1xf32>
    %cst_43 = arith.constant 9.99999974E-6 : f32
    %84 = vector.broadcast %cst_43 : f32 to vector<16x1xf32>
    %85 = arith.addf %83, %84 : vector<16x1xf32>
    %86 = math.rsqrt %85 : vector<16x1xf32>
    %87 = vector.broadcast %86 : vector<16x1xf32> to vector<16x64xf32>
    %88 = arith.mulf %78, %87 : vector<16x64xf32>
    %89 = vector.broadcast %70 : vector<1x64xf32> to vector<16x64xf32>
    %90 = arith.mulf %88, %89 : vector<16x64xf32>
    %91 = vector.broadcast %72 : vector<1x64xf32> to vector<16x64xf32>
    %92 = arith.addf %90, %91 : vector<16x64xf32>
    %93 = arith.truncf %92 : vector<16x64xf32> to vector<16x64xbf16>
    %cst_44 = arith.constant 0.000000e+00 : f32
    %94 = vector.broadcast %cst_44 : f32 to vector<16x64xf32>
    %c0_45 = arith.constant 0 : index
    %c0_46 = arith.constant 0 : index
    %c0_47 = arith.constant 0 : index
    %95 = vector.load %arg15[%c0_45, %c0_46, %c0_47] : memref<1x64x2048xbf16, #tpu.memory_space<vmem>>, vector<1x64x1024xbf16>
    %96 = vector.shape_cast %95 : vector<1x64x1024xbf16> to vector<64x1024xbf16>
    %cst_48 = arith.constant dense<0.000000e+00> : vector<16x1024xf32>
    %97 = tpu.matmul %93, %96, %cst_48 {dimension_numbers = #tpu.dot_dimension_numbers<[1], [0], [0], [1], [0, 0, 1, 1], [], []>} : vector<16x64xbf16>, vector<64x1024xbf16>, vector<16x1024xf32> -> vector<16x1024xf32>
    %c0_49 = arith.constant 0 : index
    %c0_50 = arith.constant 0 : index
    %c0_51 = arith.constant 0 : index
    %98 = vector.load %arg16[%c0_49, %c0_50, %c0_51] : memref<1x1x2048xf32, #tpu.memory_space<vmem>>, vector<1x1x1024xf32>
    %99 = vector.shape_cast %98 : vector<1x1x1024xf32> to vector<1x1024xf32>
    %100 = vector.broadcast %99 : vector<1x1024xf32> to vector<16x1024xf32>
    %101 = arith.addf %97, %100 : vector<16x1024xf32>
    %cst_52 = arith.constant 0.000000e+00 : f32
    %102 = vector.broadcast %cst_52 : f32 to vector<16x1024xf32>
    %103 = arith.maximumf %101, %102 : vector<16x1024xf32>
    %104 = arith.truncf %103 : vector<16x1024xf32> to vector<16x1024xbf16>
    %c0_53 = arith.constant 0 : index
    %c0_54 = arith.constant 0 : index
    %c0_55 = arith.constant 0 : index
    %105 = vector.load %arg17[%c0_53, %c0_54, %c0_55] : memref<1x2048x64xbf16, #tpu.memory_space<vmem>>, vector<1x1024x64xbf16>
    %106 = vector.shape_cast %105 : vector<1x1024x64xbf16> to vector<1024x64xbf16>
    %cst_56 = arith.constant dense<0.000000e+00> : vector<16x64xf32>
    %107 = tpu.matmul %104, %106, %cst_56 {dimension_numbers = #tpu.dot_dimension_numbers<[1], [0], [0], [1], [0, 0, 1, 1], [], []>} : vector<16x1024xbf16>, vector<1024x64xbf16>, vector<16x64xf32> -> vector<16x64xf32>
    %108 = arith.addf %94, %107 : vector<16x64xf32>
    %c0_57 = arith.constant 0 : index
    %c0_58 = arith.constant 0 : index
    %c1024 = arith.constant 1024 : index
    %109 = vector.load %arg15[%c0_57, %c0_58, %c1024] : memref<1x64x2048xbf16, #tpu.memory_space<vmem>>, vector<1x64x1024xbf16>
    %110 = vector.shape_cast %109 : vector<1x64x1024xbf16> to vector<64x1024xbf16>
    %cst_59 = arith.constant dense<0.000000e+00> : vector<16x1024xf32>
    %111 = tpu.matmul %93, %110, %cst_59 {dimension_numbers = #tpu.dot_dimension_numbers<[1], [0], [0], [1], [0, 0, 1, 1], [], []>} : vector<16x64xbf16>, vector<64x1024xbf16>, vector<16x1024xf32> -> vector<16x1024xf32>
    %c0_60 = arith.constant 0 : index
    %c0_61 = arith.constant 0 : index
    %c1024_62 = arith.constant 1024 : index
    %112 = vector.load %arg16[%c0_60, %c0_61, %c1024_62] : memref<1x1x2048xf32, #tpu.memory_space<vmem>>, vector<1x1x1024xf32>
    %113 = vector.shape_cast %112 : vector<1x1x1024xf32> to vector<1x1024xf32>
    %114 = vector.broadcast %113 : vector<1x1024xf32> to vector<16x1024xf32>
    %115 = arith.addf %111, %114 : vector<16x1024xf32>
    %cst_63 = arith.constant 0.000000e+00 : f32
    %116 = vector.broadcast %cst_63 : f32 to vector<16x1024xf32>
    %117 = arith.maximumf %115, %116 : vector<16x1024xf32>
    %118 = arith.truncf %117 : vector<16x1024xf32> to vector<16x1024xbf16>
    %c0_64 = arith.constant 0 : index
    %c1024_65 = arith.constant 1024 : index
    %c0_66 = arith.constant 0 : index
    %119 = vector.load %arg17[%c0_64, %c1024_65, %c0_66] : memref<1x2048x64xbf16, #tpu.memory_space<vmem>>, vector<1x1024x64xbf16>
    %120 = vector.shape_cast %119 : vector<1x1024x64xbf16> to vector<1024x64xbf16>
    %cst_67 = arith.constant dense<0.000000e+00> : vector<16x64xf32>
    %121 = tpu.matmul %118, %120, %cst_67 {dimension_numbers = #tpu.dot_dimension_numbers<[1], [0], [0], [1], [0, 0, 1, 1], [], []>} : vector<16x1024xbf16>, vector<1024x64xbf16>, vector<16x64xf32> -> vector<16x64xf32>
    %122 = arith.addf %108, %121 : vector<16x64xf32>
    %c0_68 = arith.constant 0 : index
    %c0_69 = arith.constant 0 : index
    %c0_70 = arith.constant 0 : index
    %123 = vector.load %arg18[%c0_68, %c0_69, %c0_70] : memref<1x1x64xf32, #tpu.memory_space<vmem>>, vector<1x1x64xf32>
    %124 = vector.shape_cast %123 : vector<1x1x64xf32> to vector<1x64xf32>
    %125 = vector.broadcast %124 : vector<1x64xf32> to vector<16x64xf32>
    %126 = arith.addf %122, %125 : vector<16x64xf32>
    %127 = arith.addf %92, %126 : vector<16x64xf32>
    %c0_71 = arith.constant 0 : index
    %c0_72 = arith.constant 0 : index
    %c0_73 = arith.constant 0 : index
    %128 = vector.load %arg19[%c0_71, %c0_72, %c0_73] : memref<1x1x64xf32, #tpu.memory_space<vmem>>, vector<1x1x64xf32>
    %129 = vector.shape_cast %128 : vector<1x1x64xf32> to vector<1x64xf32>
    %c0_74 = arith.constant 0 : index
    %c0_75 = arith.constant 0 : index
    %c0_76 = arith.constant 0 : index
    %130 = vector.load %arg20[%c0_74, %c0_75, %c0_76] : memref<1x1x64xf32, #tpu.memory_space<vmem>>, vector<1x1x64xf32>
    %131 = vector.shape_cast %130 : vector<1x1x64xf32> to vector<1x64xf32>
    %cst_77 = arith.constant dense<0.000000e+00> : vector<16xf32>
    %132 = vector.multi_reduction <add>, %127, %cst_77 [1] : vector<16x64xf32> to vector<16xf32>
    %133 = vector.shape_cast %132 : vector<16xf32> to vector<16x1xf32>
    %cst_78 = arith.constant 6.400000e+01 : f32
    %134 = vector.broadcast %cst_78 : f32 to vector<16x1xf32>
    %135 = arith.divf %133, %134 : vector<16x1xf32>
    %136 = vector.broadcast %135 : vector<16x1xf32> to vector<16x64xf32>
    %137 = arith.subf %127, %136 : vector<16x64xf32>
    %138 = arith.mulf %137, %137 : vector<16x64xf32>
    %cst_79 = arith.constant dense<0.000000e+00> : vector<16xf32>
    %139 = vector.multi_reduction <add>, %138, %cst_79 [1] : vector<16x64xf32> to vector<16xf32>
    %140 = vector.shape_cast %139 : vector<16xf32> to vector<16x1xf32>
    %cst_80 = arith.constant 6.400000e+01 : f32
    %141 = vector.broadcast %cst_80 : f32 to vector<16x1xf32>
    %142 = arith.divf %140, %141 : vector<16x1xf32>
    %cst_81 = arith.constant 9.99999974E-6 : f32
    %143 = vector.broadcast %cst_81 : f32 to vector<16x1xf32>
    %144 = arith.addf %142, %143 : vector<16x1xf32>
    %145 = math.rsqrt %144 : vector<16x1xf32>
    %146 = vector.broadcast %145 : vector<16x1xf32> to vector<16x64xf32>
    %147 = arith.mulf %137, %146 : vector<16x64xf32>
    %148 = vector.broadcast %129 : vector<1x64xf32> to vector<16x64xf32>
    %149 = arith.mulf %147, %148 : vector<16x64xf32>
    %150 = vector.broadcast %131 : vector<1x64xf32> to vector<16x64xf32>
    %151 = arith.addf %149, %150 : vector<16x64xf32>
    %c0_82 = arith.constant 0 : index
    %c0_83 = arith.constant 0 : index
    %152 = vector.load %arg30[%c0_82, %c0_83] : memref<16x64xf32, #tpu.memory_space<vmem>>, vector<16x64xf32>
    tpu.vector_store %arg30[%c0_82, %c0_83], %151 {strides = array<i32>} : memref<16x64xf32, #tpu.memory_space<vmem>>, vector<16x64xf32>,
    %c1_i32 = arith.constant 1 : i32
    %153 = arith.cmpi eq, %arg1, %c1_i32 : i32
    %154 = arith.extui %153 : i1 to i32
    %c0_i32_84 = arith.constant 0 : i32
    %155 = arith.cmpi ne, %154, %c0_i32_84 : i32
    scf.if %155 {
      %156 = arith.truncf %151 : vector<16x64xf32> to vector<16x64xbf16>
      %c0_85 = arith.constant 0 : index
      %c0_86 = arith.constant 0 : index
      %157 = vector.load %arg21[%c0_85, %c0_86] : memref<64x32xbf16, #tpu.memory_space<vmem>>, vector<64x32xbf16>
      %cst_87 = arith.constant dense<0.000000e+00> : vector<16x32xf32>
      %158 = tpu.matmul %156, %157, %cst_87 {dimension_numbers = #tpu.dot_dimension_numbers<[1], [0], [0], [1], [0, 0, 1, 1], [], []>} : vector<16x64xbf16>, vector<64x32xbf16>, vector<16x32xf32> -> vector<16x32xf32>
      %c0_88 = arith.constant 0 : index
      %c0_89 = arith.constant 0 : index
      %159 = vector.load %arg22[%c0_88, %c0_89] : memref<1x32xf32, #tpu.memory_space<vmem>>, vector<1x32xf32>
      %160 = vector.broadcast %159 : vector<1x32xf32> to vector<16x32xf32>
      %161 = arith.addf %158, %160 : vector<16x32xf32>
      %cst_90 = arith.constant 0.000000e+00 : f32
      %162 = vector.broadcast %cst_90 : f32 to vector<16x32xf32>
      %163 = arith.cmpf oge, %161, %162 : vector<16x32xf32>
      %cst_91 = arith.constant 0.00999999977 : f32
      %164 = vector.broadcast %cst_91 : f32 to vector<16x32xf32>
      %165 = arith.mulf %164, %161 : vector<16x32xf32>
      %166 = arith.select %163, %161, %165 : vector<16x32xi1>, vector<16x32xf32>
      %167 = arith.truncf %166 : vector<16x32xf32> to vector<16x32xbf16>
      %c0_92 = arith.constant 0 : index
      %c0_93 = arith.constant 0 : index
      %168 = vector.load %arg23[%c0_92, %c0_93] : memref<32x1xbf16, #tpu.memory_space<vmem>>, vector<32x1xbf16>
      %cst_94 = arith.constant dense<0.000000e+00> : vector<16x1xf32>
      %169 = tpu.matmul %167, %168, %cst_94 {dimension_numbers = #tpu.dot_dimension_numbers<[1], [0], [0], [1], [0, 0, 1, 1], [], []>} : vector<16x32xbf16>, vector<32x1xbf16>, vector<16x1xf32> -> vector<16x1xf32>
      %c0_95 = arith.constant 0 : index
      %c0_96 = arith.constant 0 : index
      %170 = vector.load %arg24[%c0_95, %c0_96] : memref<1x1xf32, #tpu.memory_space<vmem>>, vector<1x1xf32>
      %171 = vector.broadcast %170 : vector<1x1xf32> to vector<16x1xf32>
      %172 = arith.addf %169, %171 : vector<16x1xf32>
      %c0_97 = arith.constant 0 : index
      %c0_98 = arith.constant 0 : index
      %173 = vector.load %arg25[%c0_97, %c0_98] : memref<16x12xbf16, #tpu.memory_space<vmem>>, vector<16x12xbf16>
      %174 = arith.extf %173 : vector<16x12xbf16> to vector<16x12xf32>
      %175 = vector.broadcast %172 : vector<16x1xf32> to vector<16x12xf32>
      %176 = arith.mulf %175, %174 : vector<16x12xf32>
      %cst_99 = arith.constant dense<0.000000e+00> : vector<12xf32>
      %177 = vector.multi_reduction <add>, %176, %cst_99 [0] : vector<16x12xf32> to vector<12xf32>
      %178 = vector.shape_cast %177 : vector<12xf32> to vector<1x12xf32>
      %c0_100 = arith.constant 0 : index
      %c0_101 = arith.constant 0 : index
      %179 = vector.load %arg26[%c0_100, %c0_101] : memref<1x12xf32, #tpu.memory_space<vmem>>, vector<1x12xf32>
      %180 = arith.addf %178, %179 : vector<1x12xf32>
      %cst_102 = arith.constant 0.000000e+00 : f32
      %181 = vector.broadcast %cst_102 : f32 to vector<1x12xf32>
      %182 = arith.cmpf oge, %180, %181 : vector<1x12xf32>
      %cst_103 = arith.constant 0.00999999977 : f32
      %183 = vector.broadcast %cst_103 : f32 to vector<1x12xf32>
      %184 = arith.mulf %183, %180 : vector<1x12xf32>
      %185 = arith.select %182, %180, %184 : vector<1x12xi1>, vector<1x12xf32>
      %186 = arith.truncf %185 : vector<1x12xf32> to vector<1x12xbf16>
      %c0_104 = arith.constant 0 : index
      %c0_105 = arith.constant 0 : index
      %187 = vector.load %arg27[%c0_104, %c0_105] : memref<12x8xbf16, #tpu.memory_space<vmem>>, vector<12x8xbf16>
      %cst_106 = arith.constant dense<0.000000e+00> : vector<1x8xf32>
      %188 = tpu.matmul %186, %187, %cst_106 {dimension_numbers = #tpu.dot_dimension_numbers<[1], [0], [0], [1], [0, 0, 1, 1], [], []>} : vector<1x12xbf16>, vector<12x8xbf16>, vector<1x8xf32> -> vector<1x8xf32>
      %c0_107 = arith.constant 0 : index
      %c0_108 = arith.constant 0 : index
      %189 = vector.load %arg28[%c0_107, %c0_108] : memref<1x8xf32, #tpu.memory_space<vmem>>, vector<1x8xf32>
      %190 = arith.addf %188, %189 : vector<1x8xf32>
      %c0_109 = arith.constant 0 : index
      %c0_110 = arith.constant 0 : index
      %c0_111 = arith.constant 0 : index
      %191 = vector.load %arg29[%c0_109, %c0_110, %c0_111] : memref<1x1x8xf32, #tpu.memory_space<vmem>>, vector<1x1x8xf32>
      %192 = vector.shape_cast %191 : vector<1x1x8xf32> to vector<1x8xf32>
      %193 = vector.shape_cast %190 : vector<1x8xf32> to vector<1x1x8xf32>
      tpu.vector_store %arg29[%c0_109, %c0_110, %c0_111], %193 {strides = array<i32>} : memref<1x1x8xf32, #tpu.memory_space<vmem>>, vector<1x1x8xf32>,
    } else {
    }
    return
  }
  func.func @transform_0(%arg0: i32, %arg1: i32) -> (i32, i32, i32) {
    %c0_i32 = arith.constant 0 : i32
    %c0_i32_0 = arith.constant 0 : i32
    %c0_i32_1 = arith.constant 0 : i32
    return %arg0, %c0_i32, %c0_i32_0 : i32, i32, i32
  }
  func.func @transform_1(%arg0: i32, %arg1: i32) -> (i32, i32, i32) {
    %c0_i32 = arith.constant 0 : i32
    %c0_i32_0 = arith.constant 0 : i32
    %c0_i32_1 = arith.constant 0 : i32
    return %arg0, %c0_i32, %c0_i32_0 : i32, i32, i32
  }
  func.func @transform_2(%arg0: i32, %arg1: i32) -> (i32, i32) {
    %c0_i32 = arith.constant 0 : i32
    %c0_i32_0 = arith.constant 0 : i32
    %c0_i32_1 = arith.constant 0 : i32
    return %c0_i32, %c0_i32_0 : i32, i32
  }
  func.func @transform_3(%arg0: i32, %arg1: i32) -> (i32, i32) {
    %c0_i32 = arith.constant 0 : i32
    %c0_i32_0 = arith.constant 0 : i32
    %c0_i32_1 = arith.constant 0 : i32
    return %c0_i32, %c0_i32_0 : i32, i32
  }
  func.func @transform_4(%arg0: i32, %arg1: i32) -> (i32, i32) {
    %c0_i32 = arith.constant 0 : i32
    %c0_i32_0 = arith.constant 0 : i32
    %c0_i32_1 = arith.constant 0 : i32
    return %c0_i32, %c0_i32_0 : i32, i32
  }
  func.func @transform_5(%arg0: i32, %arg1: i32) -> (i32, i32) {
    %c0_i32 = arith.constant 0 : i32
    %c0_i32_0 = arith.constant 0 : i32
    %c0_i32_1 = arith.constant 0 : i32
    return %c0_i32, %c0_i32_0 : i32, i32
  }
  func.func @transform_6(%arg0: i32, %arg1: i32) -> (i32, i32) {
    %c0_i32 = arith.constant 0 : i32
    %c0_i32_0 = arith.constant 0 : i32
    %c0_i32_1 = arith.constant 0 : i32
    return %c0_i32, %c0_i32_0 : i32, i32
  }
  func.func @transform_7(%arg0: i32, %arg1: i32) -> (i32, i32, i32) {
    %c0_i32 = arith.constant 0 : i32
    %c0_i32_0 = arith.constant 0 : i32
    %c0_i32_1 = arith.constant 0 : i32
    return %arg1, %c0_i32, %c0_i32_0 : i32, i32, i32
  }
  func.func @transform_8(%arg0: i32, %arg1: i32) -> (i32, i32, i32) {
    %c0_i32 = arith.constant 0 : i32
    %c0_i32_0 = arith.constant 0 : i32
    %c0_i32_1 = arith.constant 0 : i32
    return %arg1, %c0_i32, %c0_i32_0 : i32, i32, i32
  }
  func.func @transform_9(%arg0: i32, %arg1: i32) -> (i32, i32, i32) {
    %c0_i32 = arith.constant 0 : i32
    %c0_i32_0 = arith.constant 0 : i32
    %c0_i32_1 = arith.constant 0 : i32
    return %arg1, %c0_i32, %c0_i32_0 : i32, i32, i32
  }
  func.func @transform_10(%arg0: i32, %arg1: i32) -> (i32, i32, i32) {
    %c0_i32 = arith.constant 0 : i32
    %c0_i32_0 = arith.constant 0 : i32
    %c0_i32_1 = arith.constant 0 : i32
    return %arg1, %c0_i32, %c0_i32_0 : i32, i32, i32
  }
  func.func @transform_11(%arg0: i32, %arg1: i32) -> (i32, i32, i32) {
    %c0_i32 = arith.constant 0 : i32
    %c0_i32_0 = arith.constant 0 : i32
    %c0_i32_1 = arith.constant 0 : i32
    return %arg1, %c0_i32, %c0_i32_0 : i32, i32, i32
  }
  func.func @transform_12(%arg0: i32, %arg1: i32) -> (i32, i32, i32) {
    %c0_i32 = arith.constant 0 : i32
    %c0_i32_0 = arith.constant 0 : i32
    %c0_i32_1 = arith.constant 0 : i32
    return %arg1, %c0_i32, %c0_i32_0 : i32, i32, i32
  }
  func.func @transform_13(%arg0: i32, %arg1: i32) -> (i32, i32, i32) {
    %c0_i32 = arith.constant 0 : i32
    %c0_i32_0 = arith.constant 0 : i32
    %c0_i32_1 = arith.constant 0 : i32
    return %arg1, %c0_i32, %c0_i32_0 : i32, i32, i32
  }
  func.func @transform_14(%arg0: i32, %arg1: i32) -> (i32, i32, i32) {
    %c0_i32 = arith.constant 0 : i32
    %c0_i32_0 = arith.constant 0 : i32
    %c0_i32_1 = arith.constant 0 : i32
    return %arg1, %c0_i32, %c0_i32_0 : i32, i32, i32
  }
  func.func @transform_15(%arg0: i32, %arg1: i32) -> (i32, i32, i32) {
    %c0_i32 = arith.constant 0 : i32
    %c0_i32_0 = arith.constant 0 : i32
    %c0_i32_1 = arith.constant 0 : i32
    return %arg1, %c0_i32, %c0_i32_0 : i32, i32, i32
  }
  func.func @transform_16(%arg0: i32, %arg1: i32) -> (i32, i32, i32) {
    %c0_i32 = arith.constant 0 : i32
    %c0_i32_0 = arith.constant 0 : i32
    %c0_i32_1 = arith.constant 0 : i32
    return %arg1, %c0_i32, %c0_i32_0 : i32, i32, i32
  }
  func.func @transform_17(%arg0: i32, %arg1: i32) -> (i32, i32, i32) {
    %c0_i32 = arith.constant 0 : i32
    %c0_i32_0 = arith.constant 0 : i32
    %c0_i32_1 = arith.constant 0 : i32
    return %arg1, %c0_i32, %c0_i32_0 : i32, i32, i32
  }
  func.func @transform_18(%arg0: i32, %arg1: i32) -> (i32, i32, i32) {
    %c0_i32 = arith.constant 0 : i32
    %c0_i32_0 = arith.constant 0 : i32
    %c0_i32_1 = arith.constant 0 : i32
    return %arg1, %c0_i32, %c0_i32_0 : i32, i32, i32
  }
  func.func @transform_19(%arg0: i32, %arg1: i32) -> (i32, i32) {
    %c0_i32 = arith.constant 0 : i32
    %c0_i32_0 = arith.constant 0 : i32
    %c0_i32_1 = arith.constant 0 : i32
    return %c0_i32, %c0_i32_0 : i32, i32
  }
  func.func @transform_20(%arg0: i32, %arg1: i32) -> (i32, i32) {
    %c0_i32 = arith.constant 0 : i32
    %c0_i32_0 = arith.constant 0 : i32
    %c0_i32_1 = arith.constant 0 : i32
    return %c0_i32, %c0_i32_0 : i32, i32
  }
  func.func @transform_21(%arg0: i32, %arg1: i32) -> (i32, i32) {
    %c0_i32 = arith.constant 0 : i32
    %c0_i32_0 = arith.constant 0 : i32
    %c0_i32_1 = arith.constant 0 : i32
    return %c0_i32, %c0_i32_0 : i32, i32
  }
  func.func @transform_22(%arg0: i32, %arg1: i32) -> (i32, i32) {
    %c0_i32 = arith.constant 0 : i32
    %c0_i32_0 = arith.constant 0 : i32
    %c0_i32_1 = arith.constant 0 : i32
    return %c0_i32, %c0_i32_0 : i32, i32
  }
  func.func @transform_23(%arg0: i32, %arg1: i32) -> (i32, i32) {
    %c0_i32 = arith.constant 0 : i32
    %c0_i32_0 = arith.constant 0 : i32
    %c0_i32_1 = arith.constant 0 : i32
    return %c0_i32, %c0_i32_0 : i32, i32
  }
  func.func @transform_24(%arg0: i32, %arg1: i32) -> (i32, i32) {
    %c0_i32 = arith.constant 0 : i32
    %c0_i32_0 = arith.constant 0 : i32
    %c0_i32_1 = arith.constant 0 : i32
    return %c0_i32, %c0_i32_0 : i32, i32
  }
  func.func @transform_25(%arg0: i32, %arg1: i32) -> (i32, i32) {
    %c0_i32 = arith.constant 0 : i32
    %c0_i32_0 = arith.constant 0 : i32
    %c0_i32_1 = arith.constant 0 : i32
    return %c0_i32, %c0_i32_0 : i32, i32
  }
  func.func @transform_26(%arg0: i32, %arg1: i32) -> (i32, i32) {
    %c0_i32 = arith.constant 0 : i32
    %c0_i32_0 = arith.constant 0 : i32
    %c0_i32_1 = arith.constant 0 : i32
    return %c0_i32, %c0_i32_0 : i32, i32
  }
  func.func @transform_27(%arg0: i32, %arg1: i32) -> (i32, i32, i32) {
    %c0_i32 = arith.constant 0 : i32
    %c0_i32_0 = arith.constant 0 : i32
    %c0_i32_1 = arith.constant 0 : i32
    return %arg0, %c0_i32, %c0_i32_0 : i32, i32, i32
  }
}

</mosaic_0001>

<bundles_post_ra>
// kernel: tf_model_forward.1
= control target key start
LH: loop header
LB: loop body
LE: loop exit
PB: predicated region body
PF: predicated region fallthrough
CT: control target
= control target key end

     0   :  { %s6108_s0 = inlined_call_operand.vmem [shape: f32[2,16,4], index: 0, kind: input, shape index: {}]   ;;  %s6109_s1 = inlined_call_operand.vmem [shape: f32[2,1,64], index: 1, kind: input, shape index: {}]   ;;  %s6110_s2 = inlined_call_operand.vmem [shape: f32[16,16], index: 2, kind: input, shape index: {}]   ;;  %s6111_s3 = inlined_call_operand.vmem [shape: bf16[4,32], index: 3, kind: input, shape index: {}]   ;;  %s6112_s4 = inlined_call_operand.vmem [shape: f32[1,32], index: 4, kind: input, shape index: {}]   ;;  %s6113_s5 = inlined_call_operand.vmem [shape: bf16[32,64], index: 5, kind: input, shape index: {}]   ;;  %s6114_s6 = inlined_call_operand.vmem [shape: f32[1,64], index: 6, kind: input, shape index: {}]   ;;  %s6115_s7 = inlined_call_operand.vmem [shape: bf16[2,64,192], index: 7, kind: input, shape index: {}]   ;;  %s6116_s8 = inlined_call_operand.vmem [shape: f32[2,1,192], index: 8, kind: input, shape index: {}]   ;;  %s6117_s9 = inlined_call_operand.vmem [shape: bf16[2,64,64], index: 9, kind: input, shape index: {}]   ;;  %s6118_s10 = inlined_call_operand.vmem [shape: f32[2,1,64], index: 10, kind: input, shape index: {}]   ;;  %s6119_s11 = inlined_call_operand.vmem [shape: f32[2,1,64], index: 11, kind: input, shape index: {}]   ;;  %s6120_s12 = inlined_call_operand.vmem [shape: f32[2,1,64], index: 12, kind: input, shape index: {}]   ;;  %s6121_s13 = inlined_call_operand.vmem [shape: bf16[2,64,2048], index: 13, kind: input, shape index: {}]   ;;  %s6122_s14 = inlined_call_operand.vmem [shape: f32[2,1,2048], index: 14, kind: input, shape index: {}]   ;;  %s6123_s15 = inlined_call_operand.vmem [shape: bf16[2,2048,64], index: 15, kind: input, shape index: {}]   ;;  %s6124_s16 = inlined_call_operand.vmem [shape: f32[2,1,64], index: 16, kind: input, shape index: {}]   ;;  %s6125_s17 = inlined_call_operand.vmem [shape: f32[2,1,64], index: 17, kind: input, shape index: {}]   ;;  %s6126_s18 = inlined_call_operand.vmem [shape: f32[2,1,64], index: 18, kind: input, shape index: {}]   ;;  %s6127_s19 = inlined_call_operand.vmem [shape: bf16[64,32], index: 19, kind: input, shape index: {}]   ;;  %s6128_s20 = inlined_call_operand.vmem [shape: f32[1,32], index: 20, kind: input, shape index: {}]   ;;  %s6129_s21 = inlined_call_operand.vmem [shape: bf16[32,1], index: 21, kind: input, shape index: {}]   ;;  %s6130_s22 = inlined_call_operand.<no memory space> [shape: f32[1,1], index: 22, kind: input, shape index: {}]   ;;  %s6131_s23 = inlined_call_operand.vmem [shape: bf16[16,12], index: 23, kind: input, shape index: {}]   ;;  %s6132_s24 = inlined_call_operand.vmem [shape: f32[1,12], index: 24, kind: input, shape index: {}]   ;;  %s6133_s25 = inlined_call_operand.vmem [shape: bf16[12,8], index: 25, kind: input, shape index: {}]   ;;  %s6134_s26 = inlined_call_operand.vmem [shape: f32[1,8], index: 26, kind: input, shape index: {}]   ;;  %s6135_s27 = inlined_call_operand.hbm [shape: f32[2,1,8], index: 27, kind: output, shape index: {}]  }
   0x1   :  { %6155 = sst [smem:[#allocation21_spill]] %s6108_s0  ;;  %v32_v0 = vstv %s6130_s22 }
   0x2   :  { %6156 = sst [smem:[#allocation22_spill]] %s6109_s1  ;;  %33 = vst [vmem:[#allocation3] sm:$0x1] %v32_v0 }
   0x3   :  { %6157 = sst [smem:[#allocation23_spill]] %s6110_s2 }
   0x4   :  { %6158 = sst [smem:[#allocation24_spill]] %s6111_s3 }
   0x5   :  { %6159 = sst [smem:[#allocation25_spill]] %s6112_s4 }
   0x6   :  { %6160 = sst [smem:[#allocation26_spill]] %s6113_s5 }
   0x7   :  { %6161 = sst [smem:[#allocation27_spill]] %s6114_s6 }
   0x8   :  { %6162 = sst [smem:[#allocation28_spill]] %s6115_s7 }
   0x9   :  { %6163 = sst [smem:[#allocation29_spill]] %s6116_s8 }
   0xa   :  { %6164 = sst [smem:[#allocation30_spill]] %s6117_s9 }
   0xb   :  { %6165 = sst [smem:[#allocation31_spill]] %s6118_s10 }
   0xc   :  { %6166 = sst [smem:[#allocation32_spill]] %s6119_s11 }
   0xd   :  { %6167 = sst [smem:[#allocation33_spill]] %s6127_s19 }
   0xe   :  { %6168 = sst [smem:[#allocation34_spill]] %s6128_s20 }
   0xf   :  { %6169 = sst [smem:[#allocation35_spill]] %s6129_s21 }
  0x10   :  { %6170 = sst [smem:[#allocation36_spill]] %s6131_s23 }
  0x11   :  { %6171 = sst [smem:[#allocation37_spill]] %s6132_s24 }
  0x12   :  { %6172 = sst [smem:[#allocation38_spill]] %s6133_s25 }
  0x13   :  { %6173 = sst [smem:[#allocation39_spill]] %s6134_s26 }
  0x14   :  { %6174 = sst [smem:[#allocation40_spill]] %s6135_s27 }
  0x15   :  { %34 = vsyncpa [#allocation5], 0 }
  0x16   :  { %36 = vsyncpa [#allocation5 + $0x1], 0  ;;  %s5381_s8 = smov 0   ;;  %s5383_s30 = smov 0  }
  0x17   :  { %s5385_s9 = smov 0   ;;  %s5387_s5 = smov 0  }
  0x18   :  { %s5389_s28 = smov 0   ;;  %s5391_s0 = smov 0  }
  0x19   :  { %s5393_s10 = smov 0   ;;  %s5395_s29 = smov 0  }
  0x1a LB: > { %6175 = sst [smem:[#allocation7_spill]] %s5203_s8  ;;  %s3899_s22 = sadd.s32 4294967295, %s5231_s29   ;;  %s5231_s29 = sphi %s5395_s29, %s42_s29   ;;  %s5227_s10 = sphi %s5393_s10, %s6234_s10   ;;  %s5223_s0 = sphi %s5391_s0, %s6233_s0   ;;  %s5219_s28 = sphi %s5389_s28, %s6232_s28   ;;  %s5215_s5 = sphi %s5387_s5, %s6231_s5   ;;  %s5211_s9 = sphi %s5385_s9, %s6230_s9   ;;  %s5207_s30 = sphi %s5383_s30, %s6236_s30   ;;  %s5203_s8 = sphi %s5381_s8, %s6235_s8  }
  0x1b   : > { %6176 = sst [smem:[#allocation8_spill]] %s5211_s9  ;;  %s3900_s1 = sadd.s32 4294967294, %s5231_s29  }
  0x1c   : > { %6177 = sst [smem:[#allocation9_spill]] %s5219_s28  ;;  %s51_s6 = sadd.s32 1, %s5223_s0 }
  0x1d   : > { %6178 = sst [smem:[#allocation10_spill]] %s5223_s0  ;;  %p52_p0 = scmp.ge.s32.totalorder %s51_s6, 2 }
  0x1e   : > { %6179 = sst [smem:[#allocation11_spill]] %s5227_s10  ;;  %s54_s11 = sadd.s32 1, %s5227_s10 }
  0x1f   : > { %6180 = sst [smem:[#allocation12_spill]] %s5231_s29  ;;  %p708_p1 = scmp.ne.s32.totalorder %s5211_s9, %s5207_s30 }
  0x20   : > { %p709_p2 = scmp.eq.s32.totalorder %s3899_s22, 3  ;;  %s6238_s6 = smov (%p52_p0, %s51_s6), 0 }
  0x21   : > { %6181 = sst [smem:[#allocation13_spill]] %s6238_s6  ;;  %s6240_s11 = smov (!%p52_p0, %s54_s11), %s5227_s10 }
  0x22   : > { %p5430_p3 = por %p709_p2, %p708_p1  ;;  %p714_p4 = scmp.ne.s32.totalorder %s5207_s30, %s5203_s8 }
  0x23   : > { %p56_p5 = scmp.ge.s32.totalorder %s6240_s11, 2  ;;  %p715_p6 = scmp.eq.s32.totalorder %s3900_s1, 3 }
  0x24   : > { %s6182_s2 = scalar_select %p5430_p3, 1, 0 }
  0x25   : > { %p3903_p7 = scmp.ge.s32.totalorder %s5231_s29, 1  ;;  %p868_p8 = scmp.lt.s32.totalorder %s5231_s29, 5 }
  0x26   : > { %6183 = sst [smem:[#allocation14_spill]] %s6182_s2  ;;  %s6242_s11 = smov (%p56_p5, %s6240_s11), 0 }
  0x27   : > { %6184 = sst [smem:[#allocation15_spill]] %s6242_s11  ;;  %p5440_p9 = por %p715_p6, %p714_p4 }
  0x28   : > { %p869_p10 = pnand %p3903_p7, %p868_p8  ;;  %s695_s7 = ssub.s32 %s5227_s10, %s6242_s11 }
  0x29   : > { %s6185_s3 = scalar_select %p5440_p9, 1, 0 }
  0x2a   : > { %s698_s4 = sadd.s32 1, %s5211_s9  ;;  %p696_p11 = scmp.eq.s32.totalorder %s695_s7, 0 }
  0x2b   : > { %6186 = sst [smem:[#allocation16_spill]] %s6185_s3  ;;  %872 = sbr.rel (%p869_p10) target bundleno = 3285 (0xcd5), region = 128 }
  0x2c   : > { %s5448_s22 = scalar_select %p696_p11, %s5211_s9, %s698_s4  }
  0x2e   : > { %6187 = sst [smem:[#allocation17_spill]] %s5448_s22 }
  0x30   : > { %p988_p12 = scmp.lt.s32.totalorder %s5219_s28, 1  ;;  %p996_p13 = scmp.lt.s32.totalorder %s5215_s5, 1 }
  0x31   : > { %s6190_s3 = sld [smem:[#allocation21_spill]]  ;;  %p3916_p0 = scmp.ne.s32.totalorder %s5215_s5, 0 }
  0x32   : > { %s5454_s6 = scalar_select %p988_p12, %s5219_s28, 1 }
  0x33   : > { %s5457_s0 = scalar_select %p996_p13, %s5215_s5, 1 }
  0x34   : > { %6188 = sst [smem:[#allocation18_spill]] %s5454_s6  ;;  %s4801_s7 = sshll.u32 %s5454_s6, 4 }
  0x35   : > { %s4802_s29 = sshll.u32 %s5457_s0, 6  ;;  %s6191_s28 = sld [smem:[#allocation28_spill]] }
  0x36   : > { %s3908_s24 = sshll.u32 %s5457_s0, 1  ;;  %s6193_s20 = sld [smem:[#allocation29_spill]] }
  0x37   : > { %s992_s8 = scalar_lea.vmem %s6190_s3, %s4801_s7  ;;  %s4803_s1 = sshll.u32 %s5457_s0, 5 }
  0x38   : > { %s6195_s22 = sld [smem:[#allocation30_spill]] }
  0x39   : > { %s6196_s27 = sld [smem:[#allocation31_spill]] }
  0x3a   : > { %s6197_s21 = sld [smem:[#allocation32_spill]] }
  0x3b   : > { %s5471_s26 = scalar_lea.vmem %s6191_s28, %s4802_s29  ;;  %s6200_s28 = sld [smem:[#allocation26_spill]] (!%p3916_p0) }
  0x3c   : > { %6192 = sst [smem:[#allocation19_spill]] %s5471_s26  ;;  %s5477_s11 = scalar_lea.vmem %s6193_s20, %s3908_s24 }
  0x3d   : > { %6194 = sst [smem:[#allocation20_spill]] %s5477_s11  ;;  %s4804_s20 = sshll.u32 %s5457_s0, 9 }
  0x3e   : > { %s5483_s3 = scalar_lea.vmem %s6195_s22, %s4803_s1  ;;  %s3913_s24 = sshll.u32 %s5457_s0, 4 }
  0x3f   : > { %s1012_s2 = scalar_lea.vmem %s6196_s27, %s5457_s0  ;;  %s5502_s4 = scalar_lea.vmem %s6121_s13, %s4804_s20 }
  0x40   : > { %s1015_s19 = scalar_lea.vmem %s6197_s21, %s5457_s0  ;;  %s5507_s10 = scalar_lea.vmem %s6122_s14, %s3913_s24 }
  0x41   : > { %s4805_s22 = sshll.u32 %s5457_s0, 10  ;;  %s1038_s11 = scalar_lea.vmem %s6125_s17, %s5457_s0 }
  0x42   : > { %s5517_s6 = scalar_lea.vmem %s6123_s15, %s4805_s22  ;;  %s1041_s1 = scalar_lea.vmem %s6126_s18, %s5457_s0 }
  0x43   : > { %s6198_s24 = sand.u32 1, %s5207_s30   ;;  %1046 = sbr.rel (%p3916_p0) target bundleno = 359 (0x167), region = 132 }
  0x44   : > { %s5529_s9 = scalar_lea.vmem [#allocation4], %s6198_s24  ;;  %s6199_s21 = sld [smem:[#allocation24_spill]] (!%p3916_p0) }
  0x45   : > { %s6201_s26 = smov (!%p3916_p0), %s6200_s28  ;;  %s6202_s25 = sld [smem:[#allocation18_spill]] (!%p3916_p0) }
  0x46   : > { %s6204_s23 = sld [smem:[#allocation27_spill]] (!%p3916_p0) }
  0x47   : > { %s6205_s29 = sld [smem:[#allocation22_spill]] (!%p3916_p0) }
  0x48   : > { %vm1059_vm0 = vcmask 1041408   ;;  %v1047_v2 = vld [vmem:[%s992_s8] sm:$0xff]  ;;  %v1048_v3 = vld [vmem:[%s992_s8 + $0x8] sm:$0xff]  ;;  %vm1055_vm1 = vcmask 31744   ;;  %s6203_s8 = sld [smem:[#allocation25_spill]]  ;;  %vm1104_vm4 = vcmask 261120  }
  0x49   : > { %v1049_v5 = vpack.c.bf16 %v1048_v3, %v1047_v2  ;;  %v4807_v6 = vld [vmem:[%s6200_s28 + $0x8] sm:$0xff]  ;;  %v4806_v7 = vld [vmem:[%s6201_s26] sm:$0xff]  ;;  %vm1128_vm5 = vcmask 523264  }
  0x4a   : > { %v1050_v1 = vld [vmem:[%s6199_s21] sm:$0x3]  ;;  %1114 = vmatpush.bf16.msra.mxu1 %v4807_v6 }
  0x4b   : > { %v1061_v4 = vsel %vm1059_vm0, %v1050_v1, 0 }
  0x4c   : > { %1070 = vmatpush.bf16.msra.mxu0 %v1061_v4  ;;  %v5100_v18 = vld [vmem:[%s6204_s23] ss:$0 sm:$0xff] }
  0x4d   : > { %s6206_s20 = scalar_lea.vmem %s6205_s29, %s6202_s25 }
  0x4e   : > { %1115 = vmatpush.bf16.msra.mxu1 %v4806_v7  ;;  %v5099_v9 = vld [vmem:[%s6203_s8] ss:$0 sm:$0xff] }
  0x4f   : > { %3917 = vmatmul.msk.bf16.vlgmr.msra.gmra.mxu0 %vm1055_vm1, %v1049_v5  ;;  %v5101_v19 = vld [vmem:[%s6206_s20] ss:$0 sm:$0xff] }
  0xcc   : > { %v1072_v8 = vpop.f32.mrf.mxu0 }
  0xcd   : > { %v1073_v10 = vadd.f32 %v5099_v9, %v1072_v8 }
  0xcf   : > { %v1079_v12 = vmul.f32 0.01, %v1073_v10  ;;  %vm1077_vm2 = vcmp.ge.f32.partialorder %v1073_v10, 0.0 }
  0xd1   : > { %v1081_v15 = vsel %vm1077_vm2, %v1073_v10, %v1079_v12 }
  0xd4   : > { %v1074_v11 = vpop.f32.mrf.mxu0 }
  0xd5   : > { %v1075_v13 = vadd.f32 %v5099_v9, %v1074_v11 }
  0xd7   : > { %vm1078_vm3 = vcmp.ge.f32.partialorder %v1075_v13, 0.0  ;;  %v1080_v14 = vmul.f32 0.01, %v1075_v13 }
  0xd9   : > { %v1082_v16 = vsel %vm1078_vm3, %v1075_v13, %v1080_v14 }
  0xda   : > { %v1083_v17 = vpack.c.bf16 %v1082_v16, %v1081_v15 }
  0xdc   : > { %3926 = vmatmul.msk.bf16.vlgmr.msra.gmra.mxu1 %vm1104_vm4, %v1083_v17 }
 0x159   : > { %v1117_v20 = vpop.f32.mrf.mxu1 }
 0x15a   : > { %v1118_v21 = vadd.f32 %v5100_v18, %v1117_v20 }
 0x15c   : > { %v1126_v22 = vadd.f32 %v5101_v19, %v1118_v21 }
 0x15e   : > { %1129 = vst.msk [vmem:[#allocation2] sm:$0xff] %vm1128_vm5, %v1126_v22 }
 0x161   : > { %v1119_v23 = vpop.f32.mrf.mxu1 }
 0x162   : > { %v1120_v24 = vadd.f32 %v5100_v18, %v1119_v23 }
 0x164   : > { %v1127_v25 = vadd.f32 %v5101_v19, %v1120_v24 }
 0x166   : > { %1130 = vst.msk [vmem:[#allocation2 + $0x8] sm:$0xff] %vm1128_vm5, %v1127_v25 }
 0x167 PF: > { %s6207_s21 = sld [smem:[#allocation19_spill]]  ;;  %v5568_v49 = vld [vmem:[#allocation2] sm:$0xff]  ;;  %vm1188_vm6 = vcmask 523264   ;;  %s5233_s24 = smov 64   ;;  %vm1229_vm7 = vcmask 261120   ;;  %vm1256_vm8 = vcmask 130048  }
 0x168   : > { %s6208_s25 = sld [smem:[#allocation20_spill]]  ;;  %s5234_s28 = smov 96  }
 0x169   : > { %s6209_s27 = sld [smem:[#allocation23_spill]]  ;;  %s5235_s29 = smov 32  }
 0x16a   : > { %s6212_s23 = scalar_lea.vmem %s6120_s12, %s5457_s0  ;;  %p4767_p1 = scmp.ne.s32.totalorder %s5215_s5, 1 }
 0x16b   : > { %s6215_s7 = sld [smem:[#allocation35_spill]] (!%p4767_p1) }
 0x16c   : > { %s6220_s5 = sld [smem:[#allocation37_spill]] (!%p4767_p1) }
 0x16d   : > { %v3953_v26 = vld [vmem:[%s6207_s21 + $0x30] sm:$0xf]  ;;  %v4815_v27 = vld [vmem:[%s6207_s21 + $0x34] sm:$0xf0]  ;;  %v4814_v28 = vld [vmem:[%s6207_s21 + $0x34] sm:$0xf] }
 0x16e   : > { %v3954_v29 = vor.u32 %v4815_v27, %v3953_v26  ;;  %v3955_v30 = vld [vmem:[%s6207_s21 + $0x38] sm:$0xf0]  ;;  %v3945_v31 = vld [vmem:[%s6207_s21 + $0x20] sm:$0xf]  ;;  %v4813_v32 = vld [vmem:[%s6207_s21 + $0x24] sm:$0xf0] }
 0x16f   : > { %v3958_v33 = vor.u32 %v4814_v28, %v3955_v30  ;;  %v4812_v34 = vld [vmem:[%s6207_s21 + $0x24] sm:$0xf]  ;;  %v3947_v35 = vld [vmem:[%s6207_s21 + $0x28] sm:$0xf0]  ;;  %v3946_v36 = vor.u32 %v4813_v32, %v3945_v31  ;;  %v3937_v38 = vld [vmem:[%s6207_s21 + $0x10] sm:$0xf] }
 0x170   : > { %1196 = vmatpush.bf16.msra.mxu0 %v3954_v29  ;;  %v3950_v37 = vor.u32 %v4812_v34, %v3947_v35  ;;  %v4811_v39 = vld [vmem:[%s6207_s21 + $0x14] sm:$0xf0]  ;;  %v4810_v40 = vld [vmem:[%s6207_s21 + $0x14] sm:$0xf]  ;;  %v3939_v41 = vld [vmem:[%s6207_s21 + $0x18] sm:$0xf0] }
 0x171   : > { %1210 = vmatpush.bf16.msra.mxu1 %v3958_v33  ;;  %v3938_v42 = vor.u32 %v4811_v39, %v3937_v38  ;;  %v3929_v43 = vld [vmem:[%s6207_s21] sm:$0xf]  ;;  %v3942_v44 = vor.u32 %v4810_v40, %v3939_v41  ;;  %v4809_v45 = vld [vmem:[%s6207_s21 + $0x4] sm:$0xf0]  ;;  %v4808_v46 = vld [vmem:[%s6207_s21 + $0x4] sm:$0xf] }
 0x172   : > { %v3931_v47 = vld [vmem:[%s6207_s21 + $0x8] sm:$0xf0]  ;;  %v3930_v48 = vor.u32 %v4809_v45, %v3929_v43  ;;  %v1142_v53 = vld [vmem:[%s6208_s25] sm:$0x3] }
 0x173   : > { %v5570_v50 = vld [vmem:[#allocation2 + $0x8] sm:$0xff]  ;;  %v3934_v51 = vor.u32 %v4808_v46, %v3931_v47  ;;  %v1144_v56 = vperm.slane %v1142_v53, 0  ;;  %v1145_v57 = vperm.slane %v1142_v53, 1  ;;  %v1252_v11 = vld [vmem:[%s6209_s27] sm:$0xff] }
 0x174   : > { %1197 = vmatpush.bf16.msra.mxu0 %v3946_v36  ;;  %v1133_v52 = vpack.c.bf16 %v5570_v50, %v5568_v49  ;;  %v1253_v16 = vld [vmem:[%s6209_s27 + $0x8] sm:$0xff]  ;;  %v4816_v41 = vld [vmem:[%s5483_s3] sm:$0xff] }
 0x175   : > { %1211 = vmatpush.bf16.msra.mxu1 %v3950_v37  ;;  %v4817_v40 = vld [vmem:[%s5483_s3 + $0x8] sm:$0xff] }
 0x178   : > { %1198 = vmatpush.bf16.msra.mxu0 %v3938_v42 }
 0x179   : > { %1212 = vmatpush.bf16.msra.mxu1 %v3942_v44 }
 0x17c   : > { %1199 = vmatpush.bf16.msra.mxu0 %v3930_v48 }
 0x17d   : > { %1213 = vmatpush.bf16.msra.mxu1 %v3934_v51 }
 0x17f   : > { %3959 = vmatmul.msk.bf16.vlgmr.msra.gmra.mxu0 %vm1188_vm6, %v1133_v52 }
 0x180   : > { %3960 = vmatmul.msk.bf16.vlgmr.msra.gmra.mxu1 %vm1188_vm6, %v1133_v52 }
 0x181   : > { %1432 = vmatpush.bf16.msrb.mxu1 %v4817_v40 }
 0x185   : > { %1433 = vmatpush.bf16.msrb.mxu1 %v4816_v41 }
 0x1fc   : > { %v1201_v54 = vpop.f32.mrf.mxu0 }
 0x1fd   : > { %v1215_v55 = vpop.f32.mrf.mxu1  ;;  %v1202_v58 = vadd.f32 %v1201_v54, %v1144_v56 }
 0x1fe   : > { %v1216_v59 = vadd.f32 %v1215_v55, %v1145_v57 }
 0x200   : > { %v1220_v63 = vpack.c.bf16 %v1216_v59, %v1202_v58 }
 0x202   : > { %v1224_v2 = vunpack.c.l.b16 %v1220_v63  ;;  %v1280_v4 = vunpack.c.h.b16 %v1220_v63 }
 0x204   : > { %v1203_v60 = vpop.f32.mrf.mxu0 }
 0x205   : > { %v1204_v61 = vadd.f32 %v1203_v60, %v1144_v56  ;;  %v1217_v62 = vpop.f32.mrf.mxu1 }
 0x206   : > { %v1218_v0 = vadd.f32 %v1217_v62, %v1145_v57 }
 0x208   : > { %v1221_v1 = vpack.c.bf16 %v1218_v0, %v1204_v61 }
 0x20a   : > { %v1225_v3 = vunpack.c.l.b16 %v1221_v1  ;;  %v1281_v5 = vunpack.c.h.b16 %v1221_v1 }
 0x20c   : > { %v1226_v6 = vpack.c.b16 %v1225_v3, %v1224_v2  ;;  %v5577_v7 = vpack.c.b16 %v1281_v5, %v1280_v4 }
 0x20e   : > { %1294 = vmatpush.bf16.msra.mxu3 %v5577_v7  ;;  %1227 = vrot.lane.b32.xlu0 %v1226_v6, %s5233_s24 }
 0x280   : > { %v1228_v8 = vpop.permute.xlu0 %1227 }
 0x281   : > { %v1234_v9 = vsel %vm1229_vm7, %v1228_v8, 0 }
 0x282   : > { %1243 = vmatpush.bf16.xpose.msra.mxu2 %v1234_v9 }
 0x289   : > { %3961 = vmatmul.msk.bf16.vlgmr.msra.gmra.mxu2 %vm1229_vm7, %v1226_v6 }
 0x30c   : > { %v1245_v10 = vpop.f32.mrf.mxu2 }
 0x30d   : > { %v1250_v12 = vmul.f32 0.17677669, %v1245_v10  ;;  %v4819_v10 = vld [vmem:[%s5483_s3 + $0x18] sm:$0xff] }
 0x30e   : > { %1403 = vmatpush.bf16.msrb.mxu0 %v4819_v10  ;;  %v4025_v10 = vld [vmem:[%s5502_s4 + $0x88] sm:$0xf] }
 0x30f   : > { %v1254_v13 = vadd.f32 %v1252_v11, %v1250_v12 }
 0x311   : > { %v1257_v14 = vsel %vm1256_vm8, %v1254_v13, -inf }
 0x312   : > { %1258 = vmax.xlane.f32.xlu0 %v1257_v14 }
 0x314   : > { %v1247_v15 = vpop.f32.mrf.mxu2 }
 0x315   : > { %v1251_v17 = vmul.f32 0.17677669, %v1247_v15  ;;  %v5102_v15 = vld [vmem:[%s1012_s2] ss:$0 sm:$0xff] }
 0x317   : > { %v1255_v18 = vadd.f32 %v1253_v16, %v1251_v17 }
 0x319   : > { %v1260_v19 = vsel %vm1256_vm8, %v1255_v18, -inf }
 0x31a   : > { %1261 = vmax.xlane.f32.xlu1 %v1260_v19 }
 0x385   : > { %v1259_v20 = vpop.xlane.xlu0 %1258 }
 0x386   : > { %v1263_v21 = vsub.f32 %v1254_v13, %v1259_v20 }
 0x388   : > { %v1265_v22 = vmul.f32 1.442695, %v1263_v21 }
 0x38a   : > { %5108 = vpow2.f32 %v1265_v22 }
 0x38d   : > { %v1262_v23 = vpop.xlane.xlu1 %1261 }
 0x38e   : > { %v1264_v24 = vsub.f32 %v1255_v18, %v1262_v23 }
 0x390   : > { %v5109_v25 = vpop.eup %5108  ;;  %v1267_v26 = vmul.f32 1.442695, %v1264_v24 }
 0x391   : > { %v1269_v27 = vsel %vm1256_vm8, %v5109_v25, 0.0 }
 0x392   : > { %5110 = vpow2.f32 %v1267_v26  ;;  %1270 = vadd.xlane.f32.xlu1 %v1269_v27  ;;  %v5236_v27 = vmov 64.0  }
 0x398   : > { %v5111_v28 = vpop.eup %5110 }
 0x399   : > { %v1272_v29 = vsel %vm1256_vm8, %v5111_v28, 0.0 }
 0x39a   : > { %1273 = vadd.xlane.f32.xlu2 %v1272_v29 }
 0x3ab   : > { %1306 = vrot.lane.b32.xlu1 %v1226_v6, %s5234_s28 }
 0x3b2   : > { %1308 = vrot.lane.b32.xlu2 %v1226_v6, %s5235_s29  ;;  %s6217_s29 = sld [smem:[#allocation38_spill]] (!%p4767_p1) }
 0x405   : > { %v1271_v30 = vpop.xlane.xlu1 %1270 }
 0x406   : > { %5112 = vrcp.f32 %v1271_v30 }
 0x40c   : > { %v5113_v32 = vpop.eup %5112 }
 0x40d   : > { %v1274_v31 = vpop.xlane.xlu2 %1273  ;;  %v1277_v35 = vmul.f32 %v5113_v32, %v5109_v25 }
 0x40e   : > { %5114 = vrcp.f32 %v1274_v31 }
 0x414   : > { %v5115_v33 = vpop.eup %5114 }
 0x415   : > { %v1309_v34 = vpop.permute.xlu2 %1308  ;;  %v1278_v36 = vmul.f32 %v5115_v33, %v5111_v28 }
 0x416   : > { %v1314_v37 = vsel %vm1229_vm7, %v1309_v34, 0 }
 0x417   : > { %1323 = vmatpush.bf16.xpose.msrb.mxu3 %v1314_v37  ;;  %v1279_v38 = vpack.c.bf16 %v1278_v36, %v1277_v35 }
 0x419   : > { %3962 = vmatmul.msk.bf16.vlgmr.msra.gmra.mxu3 %vm1256_vm8, %v1279_v38 }
 0x41d   : > { %v1307_v39 = vpop.permute.xlu1 %1306 }
 0x429   : > { %3963 = vmatmul.msk.bf16.vlgmr.msrb.gmra.mxu3 %vm1229_vm7, %v1307_v39 }
 0x49c   : > { %v1296_v42 = vpop.f32.mrf.mxu3 }
 0x4a4   : > { %v1298_v43 = vpop.f32.mrf.mxu3 }
 0x4a5   : > { %v1301_v44 = vpack.c.bf16 %v1298_v43, %v1296_v42  ;;  %v4081_v42 = vld [vmem:[%s5502_s4 + $0x180] sm:$0xf] }
 0x4a6   : > { %v4848_v43 = vld [vmem:[%s5502_s4 + $0x1bc] sm:$0xf0] }
 0x4a7   : > { %3982 = vmatmul.msk.bf16.vlgmr.msrb.gmra.mxu1 %vm1229_vm7, %v1301_v44  ;;  %v4844_v44 = vld [vmem:[%s5502_s4 + $0x184] sm:$0xf] }
 0x4ac   : > { %v1325_v45 = vpop.f32.mrf.mxu3 }
 0x4ad   : > { %v1330_v46 = vmul.f32 0.17677669, %v1325_v45  ;;  %v4082_v45 = vor.u32 %v4848_v43, %v4081_v42  ;;  %v4847_v42 = vld [vmem:[%s5502_s4 + $0x19c] sm:$0xf] }
 0x4ae   : > { %v4107_v43 = vld [vmem:[%s5502_s4 + $0x1d8] sm:$0xf0] }
 0x4af   : > { %v1332_v47 = vadd.f32 %v1330_v46, %v1252_v11  ;;  %v4818_v11 = vld [vmem:[%s5483_s3 + $0x10] sm:$0xff]  ;;  %v4083_v46 = vld [vmem:[%s5502_s4 + $0x1c0] sm:$0xf0]  ;;  %1729 = vmatpush.bf16.msra.mxu3 %v4082_v45  ;;  %s6219_s3 = sld [smem:[#allocation36_spill]] (!%p4767_p1) }
 0x4b0   : > { %1404 = vmatpush.bf16.msrb.mxu0 %v4818_v11  ;;  %v4833_v11 = vld [vmem:[%s5502_s4 + $0xc4] sm:$0xf0] }
 0x4b1   : > { %v1334_v48 = vsel %vm1256_vm8, %v1332_v47, -inf }
 0x4b2   : > { %1335 = vmax.xlane.f32.xlu2 %v1334_v48  ;;  %v4849_v48 = vld [vmem:[%s5502_s4 + $0x1c4] sm:$0xf0] }
 0x4b4   : > { %v1327_v51 = vpop.f32.mrf.mxu3 }
 0x4b5   : > { %v1331_v52 = vmul.f32 0.17677669, %v1327_v51  ;;  %v4086_v51 = vor.u32 %v4844_v44, %v4083_v46  ;;  %v4065_v44 = vld [vmem:[%s5502_s4 + $0x110] sm:$0xf]  ;;  %v4110_v46 = vor.u32 %v4847_v42, %v4107_v43  ;;  %v4217_v42 = vld [vmem:[%s5502_s4 + $0x1a0] sm:$0xf] }
 0x4b6   : > { %v4940_v43 = vld [vmem:[%s5502_s4 + $0x1a4] sm:$0xf] }
 0x4b7   : > { %v1333_v53 = vadd.f32 %v1331_v52, %v1253_v16 }
 0x4b9   : > { %v1337_v54 = vsel %vm1256_vm8, %v1333_v53, -inf }
 0x4ba   : > { %1338 = vmax.xlane.f32.xlu1 %v1337_v54  ;;  %v4091_v54 = vld [vmem:[%s5502_s4 + $0x1c8] sm:$0xf0] }
 0x524   : > { %v1435_v14 = vpop.f32.mrf.mxu1 }
 0x525   : > { %v1336_v55 = vpop.xlane.xlu2 %1335 }
 0x526   : > { %v1340_v56 = vsub.f32 %v1332_v47, %v1336_v55  ;;  %v4089_v47 = vld [vmem:[%s5502_s4 + $0x188] sm:$0xf] }
 0x527   : > { %v4090_v52 = vor.u32 %v4849_v48, %v4089_v47  ;;  %v4842_v47 = vld [vmem:[%s5502_s4 + $0x14c] sm:$0xf0]  ;;  %v4838_v48 = vld [vmem:[%s5502_s4 + $0x114] sm:$0xf] }
 0x528   : > { %v1342_v57 = vmul.f32 1.442695, %v1340_v56  ;;  %v4049_v56 = vld [vmem:[%s5502_s4 + $0x100] sm:$0xf] }
 0x529   : > { %1757 = vmatpush.bf16.msra.mxu0 %v4090_v52  ;;  %v4066_v52 = vor.u32 %v4842_v47, %v4065_v44  ;;  %v4219_v44 = vld [vmem:[%s5502_s4 + $0x1e0] sm:$0xf0] }
 0x52a   : > { %5116 = vpow2.f32 %v1342_v57  ;;  %v4840_v57 = vld [vmem:[%s5502_s4 + $0x13c] sm:$0xf0] }
 0x52c   : > { %v1437_v21 = vpop.f32.mrf.mxu1 }
 0x52d   : > { %v1339_v58 = vpop.xlane.xlu1 %1338 }
 0x52e   : > { %v1341_v59 = vsub.f32 %v1333_v53, %v1339_v58  ;;  %v4845_v53 = vld [vmem:[%s5502_s4 + $0x18c] sm:$0xf]  ;;  %v4836_v58 = vld [vmem:[%s5502_s4 + $0x104] sm:$0xf] }
 0x52f   : > { %v4094_v55 = vor.u32 %v4845_v53, %v4091_v54  ;;  %v4073_v54 = vld [vmem:[%s5502_s4 + $0x118] sm:$0xf] }
 0x530   : > { %v5117_v60 = vpop.eup %5116  ;;  %v1344_v61 = vmul.f32 1.442695, %v1341_v59  ;;  %v4050_v59 = vor.u32 %v4840_v57, %v4049_v56  ;;  %v4839_v56 = vld [vmem:[%s5502_s4 + $0x11c] sm:$0xf] }
 0x531   : > { %v1346_v62 = vsel %vm1256_vm8, %v5117_v60, 0.0  ;;  %1771 = vmatpush.bf16.msra.mxu1 %v4094_v55  ;;  %v4843_v55 = vld [vmem:[%s5502_s4 + $0x154] sm:$0xf0] }
 0x532   : > { %5118 = vpow2.f32 %v1344_v61  ;;  %1347 = vadd.xlane.f32.xlu0 %v1346_v62  ;;  %v4057_v61 = vld [vmem:[%s5502_s4 + $0x108] sm:$0xf]  ;;  %1730 = vmatpush.bf16.msra.mxu3 %v4050_v59  ;;  %v4074_v59 = vor.u32 %v4843_v55, %v4073_v54  ;;  %v4222_v54 = vor.u32 %v4940_v43, %v4219_v44  ;;  %v4185_v55 = vld [vmem:[%s5502_s4 + $0x120] sm:$0xf]  ;;  %v4934_v43 = vld [vmem:[%s5502_s4 + $0x134] sm:$0xf] }
 0x533   : > { %v4841_v62 = vld [vmem:[%s5502_s4 + $0x144] sm:$0xf0]  ;;  %v4203_v44 = vld [vmem:[%s5502_s4 + $0x170] sm:$0xf0] }
 0x538   : > { %v5119_v63 = vpop.eup %5118 }
 0x539   : > { %v1349_v0 = vsel %vm1256_vm8, %v5119_v63, 0.0 }
 0x53a   : > { %1350 = vadd.xlane.f32.xlu0 %v1349_v0  ;;  %v4058_v0 = vor.u32 %v4841_v62, %v4057_v61  ;;  %v4033_v61 = vld [vmem:[%s5502_s4 + $0x90] sm:$0xf] }
 0x53c   : > { %1758 = vmatpush.bf16.msra.mxu0 %v4058_v0  ;;  %v4834_v0 = vld [vmem:[%s5502_s4 + $0xcc] sm:$0xf0] }
 0x54e   : > { %1357 = vrot.lane.b32.xlu0 %v5577_v7, %s5234_s28 }
 0x5a5   : > { %v1348_v1 = vpop.xlane.xlu0 %1347 }
 0x5ad   : > { %v1351_v2 = vpop.xlane.xlu0 %1350 }
 0x5ae   : > { %5120 = vrcp.f32 %v1351_v2  ;;  %v4059_v2 = vld [vmem:[%s5502_s4 + $0x148] sm:$0xf0] }
 0x5af   : > { %5122 = vrcp.f32 %v1348_v1  ;;  %v4837_v1 = vld [vmem:[%s5502_s4 + $0x10c] sm:$0xf] }
 0x5b0   : > { %5124 = vrcp.f32 %v5236_v27 }
 0x5b4   : > { %v5121_v3 = vpop.eup %5120 }
 0x5b5   : > { %v5123_v4 = vpop.eup %5122  ;;  %v1355_v5 = vmul.f32 %v5121_v3, %v5119_v63  ;;  %v4062_v3 = vor.u32 %v4837_v1, %v4059_v2  ;;  %v4830_v1 = vld [vmem:[%s5502_s4 + $0x94] sm:$0xf] }
 0x5b6   : > { %v1354_v6 = vmul.f32 %v5123_v4, %v5117_v60  ;;  %v5125_v28 = vpop.eup %5124  ;;  %v4051_v60 = vld [vmem:[%s5502_s4 + $0x140] sm:$0xf0]  ;;  %v4017_v4 = vld [vmem:[%s5502_s4 + $0x80] sm:$0xf]  ;;  %v4035_v2 = vld [vmem:[%s5502_s4 + $0xd0] sm:$0xf0] }
 0x5b7   : > { %v1457_v29 = vmul.f32 64.0, %v5125_v28  ;;  %vm1461_vm9 = vweird.f32 %v5125_v28  ;;  %v4054_v63 = vor.u32 %v4836_v58, %v4051_v60  ;;  %1772 = vmatpush.bf16.msra.mxu1 %v4062_v3  ;;  %v4075_v60 = vld [vmem:[%s5502_s4 + $0x158] sm:$0xf0]  ;;  %v4034_v3 = vor.u32 %v4834_v0, %v4033_v61  ;;  %v4193_v61 = vld [vmem:[%s5502_s4 + $0x128] sm:$0xf] }
 0x5b8   : > { %v1356_v9 = vpack.c.bf16 %v1355_v5, %v1354_v6  ;;  %v4832_v5 = vld [vmem:[%s5502_s4 + $0xbc] sm:$0xf0]  ;;  %v4828_v6 = vld [vmem:[%s5502_s4 + $0x84] sm:$0xf]  ;;  %v4195_v0 = vld [vmem:[%s5502_s4 + $0x168] sm:$0xf0] }
 0x5b9   : > { %v1458_v30 = vsub.f32 1.0, %v1457_v29  ;;  %v3995_v29 = vld [vmem:[%s5502_s4 + $0x48] sm:$0xf0] }
 0x5bb   : > { %v1459_v31 = vmul.f32 %v5125_v28, %v1458_v30 }
 0x5c0   : > { %v1358_v8 = vpop.permute.xlu0 %1357 }
 0x5c1   : > { %1370 = vmatpush.bf16.msrb.mxu2 %v1358_v8  ;;  %v4018_v8 = vor.u32 %v4832_v5, %v4017_v4  ;;  %v4041_v4 = vld [vmem:[%s5502_s4 + $0x98] sm:$0xf] }
 0x5c2   : > { %v4835_v5 = vld [vmem:[%s5502_s4 + $0xd4] sm:$0xf0] }
 0x5c3   : > { %1731 = vmatpush.bf16.msra.mxu3 %v4018_v8  ;;  %v4038_v8 = vor.u32 %v4830_v1, %v4035_v2 }
 0x5c4   : > { %3964 = vmatmul.msk.bf16.vlgmr.msrb.gmra.mxu2 %vm1256_vm8, %v1356_v9  ;;  %v4019_v9 = vld [vmem:[%s5502_s4 + $0xc0] sm:$0xf0] }
 0x5c5   : > { %1743 = vmatpush.bf16.msra.mxu2 %v4086_v51  ;;  %v4067_v51 = vld [vmem:[%s5502_s4 + $0x150] sm:$0xf0] }
 0x5c6   : > { %v4070_v53 = vor.u32 %v4838_v48, %v4067_v51  ;;  %v4945_v48 = vld [vmem:[%s5502_s4 + $0x1e4] sm:$0xf0]  ;;  %v4941_v51 = vld [vmem:[%s5502_s4 + $0x1ac] sm:$0xf] }
 0x5c9   : > { %1744 = vmatpush.bf16.msra.mxu2 %v4054_v63  ;;  %v4078_v63 = vor.u32 %v4839_v56, %v4075_v60  ;;  %v4936_v56 = vld [vmem:[%s5502_s4 + $0x15c] sm:$0xf0]  ;;  %v4187_v60 = vld [vmem:[%s5502_s4 + $0x160] sm:$0xf0] }
 0x5ca   : > { %v4186_v1 = vor.u32 %v4936_v56, %v4185_v55  ;;  %v4169_v55 = vld [vmem:[%s5502_s4 + $0xb0] sm:$0xf] }
 0x5cb   : > { %v4930_v56 = vld [vmem:[%s5502_s4 + $0xec] sm:$0xf0] }
 0x647   : > { %v1372_v12 = vpop.f32.mrf.mxu2 }
 0x64f   : > { %v1374_v7 = vpop.f32.mrf.mxu2 }
 0x650   : > { %v1377_v13 = vpack.c.bf16 %v1374_v7, %v1372_v12  ;;  %v4022_v12 = vor.u32 %v4828_v6, %v4019_v9  ;;  %v4026_v7 = vor.u32 %v4833_v11, %v4025_v10  ;;  %v4042_v9 = vor.u32 %v4835_v5, %v4041_v4  ;;  %v4831_v10 = vld [vmem:[%s5502_s4 + $0x9c] sm:$0xf]  ;;  %v4928_v4 = vld [vmem:[%s5502_s4 + $0xdc] sm:$0xf0] }
 0x651   : > { %v4043_v11 = vld [vmem:[%s5502_s4 + $0xd8] sm:$0xf0] }
 0x652   : > { %3973 = vmatmul.msk.bf16.vlgmr.msrb.gmra.mxu0 %vm1229_vm7, %v1377_v13  ;;  %v4829_v13 = vld [vmem:[%s5502_s4 + $0x8c] sm:$0xf]  ;;  %1745 = vmatpush.bf16.msra.mxu2 %v4022_v12  ;;  %v4001_v12 = vld [vmem:[%s5502_s4 + $0x10] sm:$0xf] }
 0x653   : > { %1759 = vmatpush.bf16.msra.mxu0 %v4026_v7  ;;  %v4046_v7 = vor.u32 %v4831_v10, %v4043_v11  ;;  %v4161_v10 = vld [vmem:[%s5502_s4 + $0xa8] sm:$0xf] }
 0x654   : > { %v4929_v11 = vld [vmem:[%s5502_s4 + $0xe4] sm:$0xf0] }
 0x6cf   : > { %v1406_v16 = vpop.f32.mrf.mxu0 }
 0x6d0   : > { %v1436_v17 = vadd.f32 %v1435_v14, %v1406_v16  ;;  %v4027_v14 = vld [vmem:[%s5502_s4 + $0xc8] sm:$0xf0] }
 0x6d1   : > { %v4030_v16 = vor.u32 %v4829_v13, %v4027_v14  ;;  %v4826_v13 = vld [vmem:[%s5502_s4 + $0x4c] sm:$0xf0]  ;;  %v4822_v14 = vld [vmem:[%s5502_s4 + $0x14] sm:$0xf] }
 0x6d2   : > { %v1444_v18 = vadd.f32 %v5102_v15, %v1436_v17 }
 0x6d3   : > { %1773 = vmatpush.bf16.msra.mxu1 %v4030_v16 }
 0x6d4   : > { %v1446_v19 = vadd.f32 %v1444_v18, %v5568_v49  ;;  %v1460_v49 = vadd.f32 %v5125_v28, %v1459_v31  ;;  %v3985_v18 = vld [vmem:[%s5502_s4] sm:$0xf]  ;;  %v4097_v31 = vld [vmem:[%s5502_s4 + $0x190] sm:$0xf] }
 0x6d6   : > { %v1450_v20 = vsel %vm1188_vm6, %v1446_v19, 0.0  ;;  %v5618_v32 = vsel %vm1461_vm9, %v5125_v28, %v1460_v49  ;;  %v4821_v28 = vld [vmem:[%s5502_s4 + $0xc] sm:$0xf]  ;;  %v4850_v49 = vld [vmem:[%s5502_s4 + $0x1cc] sm:$0xf0] }
 0x6d7   : > { %1451 = vadd.xlane.f32.xlu2 %v1450_v20  ;;  %v1408_v22 = vpop.f32.mrf.mxu0  ;;  %v4820_v20 = vld [vmem:[%s5502_s4 + $0x4] sm:$0xf]  ;;  %v3998_v30 = vor.u32 %v4821_v28, %v3995_v29 }
 0x6d8   : > { %v1438_v23 = vadd.f32 %v1437_v21, %v1408_v22  ;;  %v3987_v22 = vld [vmem:[%s5502_s4 + $0x40] sm:$0xf0] }
 0x6d9   : > { %1774 = vmatpush.bf16.msra.mxu1 %v3998_v30 }
 0x6da   : > { %v1445_v24 = vadd.f32 %v5102_v15, %v1438_v23  ;;  %v3993_v23 = vld [vmem:[%s5502_s4 + $0x8] sm:$0xf] }
 0x6dc   : > { %v1447_v25 = vadd.f32 %v1445_v24, %v5570_v50  ;;  %v4825_v24 = vld [vmem:[%s5502_s4 + $0x44] sm:$0xf0] }
 0x6dd   : > { %v3994_v27 = vor.u32 %v4825_v24, %v3993_v23  ;;  %1827 = vmatpush.bf16.msrb.mxu1 %v4110_v46 }
 0x6de   : > { %v1453_v26 = vsel %vm1188_vm6, %v1447_v25, 0.0 }
 0x6df   : > { %1454 = vadd.xlane.f32.xlu2 %v1453_v26  ;;  %v3990_v26 = vor.u32 %v4820_v20, %v3987_v22  ;;  %1760 = vmatpush.bf16.msra.mxu0 %v3994_v27  ;;  %v4823_v20 = vld [vmem:[%s5502_s4 + $0x1c] sm:$0xf] }
 0x6e1   : > { %1746 = vmatpush.bf16.msra.mxu2 %v3990_v26  ;;  %1828 = vmatpush.bf16.msrb.mxu1 %v4078_v63  ;;  %v4933_v63 = vld [vmem:[%s5502_s4 + $0x12c] sm:$0xf] }
 0x6e5   : > { %1829 = vmatpush.bf16.msrb.mxu1 %v4046_v7  ;;  %v4163_v7 = vld [vmem:[%s5502_s4 + $0xe8] sm:$0xf0] }
 0x74a   : > { %v1452_v33 = vpop.xlane.xlu2 %1451 }
 0x74b   : > { %v1463_v50 = vmul.f32 %v5618_v32, %v1452_v33  ;;  %v4846_v33 = vld [vmem:[%s5502_s4 + $0x194] sm:$0xf] }
 0x74d   : > { %v5621_v34 = vsub.f32 %v1446_v19, %v1463_v50  ;;  %v4824_v19 = vld [vmem:[%s5502_s4 + $0x3c] sm:$0xf0]  ;;  %v4098_v50 = vor.u32 %v4850_v49, %v4097_v31 }
 0x74e   : > { %v3986_v21 = vor.u32 %v4824_v19, %v3985_v18  ;;  %v4827_v18 = vld [vmem:[%s5502_s4 + $0x54] sm:$0xf0]  ;;  %v4002_v19 = vor.u32 %v4826_v13, %v4001_v12  ;;  %v4925_v12 = vld [vmem:[%s5502_s4 + $0xac] sm:$0xf] }
 0x74f   : > { %v1467_v35 = vmul.f32 %v5621_v34, %v5621_v34 }
 0x750   : > { %1732 = vmatpush.bf16.msra.mxu3 %v3986_v21  ;;  %v4011_v21 = vld [vmem:[%s5502_s4 + $0x58] sm:$0xf0] }
 0x751   : > { %v1469_v36 = vsel %vm1188_vm6, %v1467_v35, 0.0  ;;  %v4099_v35 = vld [vmem:[%s5502_s4 + $0x1d0] sm:$0xf0]  ;;  %v4014_v27 = vor.u32 %v4823_v20, %v4011_v21  ;;  %v4123_v20 = vld [vmem:[%s5502_s4 + $0x60] sm:$0xf0] }
 0x752   : > { %1470 = vadd.xlane.f32.xlu1 %v1469_v36  ;;  %v1455_v37 = vpop.xlane.xlu2 %1454  ;;  %v4105_v36 = vld [vmem:[%s5502_s4 + $0x198] sm:$0xf]  ;;  %v4129_v21 = vld [vmem:[%s5502_s4 + $0x28] sm:$0xf] }
 0x753   : > { %v1464_v38 = vmul.f32 %v5618_v32, %v1455_v37  ;;  %v4851_v37 = vld [vmem:[%s5502_s4 + $0x1d4] sm:$0xf0]  ;;  %1830 = vmatpush.bf16.msrb.mxu1 %v4014_v27 }
 0x754   : > { %1785 = vmatpush.bf16.msrb.mxu3 %v4098_v50 }
 0x755   : > { %v5627_v39 = vsub.f32 %v1447_v25, %v1464_v38 }
 0x757   : > { %v1468_v40 = vmul.f32 %v5627_v39, %v5627_v39 }
 0x758   : > { %1786 = vmatpush.bf16.msrb.mxu3 %v4066_v52 }
 0x759   : > { %v1472_v41 = vsel %vm1188_vm6, %v1468_v40, 0.0  ;;  %v4102_v40 = vor.u32 %v4846_v33, %v4099_v35 }
 0x75a   : > { %1473 = vadd.xlane.f32.xlu0 %v1472_v41  ;;  %v4106_v41 = vor.u32 %v4851_v37, %v4105_v36  ;;  %v5104_v37 = vld [vmem:[%s6212_s23] ss:$0 sm:$0xff] }
 0x75b   : > { %1799 = vmatpush.bf16.msrb.mxu2 %v4102_v40 }
 0x75c   : > { %1813 = vmatpush.bf16.msrb.mxu0 %v4106_v41  ;;  %1787 = vmatpush.bf16.msrb.mxu3 %v4034_v3  ;;  %v4153_v3 = vld [vmem:[%s5502_s4 + $0xa0] sm:$0xf] }
 0x75d   : > { %v4154_v13 = vor.u32 %v4928_v4, %v4153_v3  ;;  %v4137_v3 = vld [vmem:[%s5502_s4 + $0x30] sm:$0xf] }
 0x75e   : > { %v4922_v4 = vld [vmem:[%s5502_s4 + $0x6c] sm:$0xf0] }
 0x75f   : > { %1800 = vmatpush.bf16.msrb.mxu2 %v4070_v53 }
 0x760   : > { %1814 = vmatpush.bf16.msrb.mxu0 %v4074_v59  ;;  %1788 = vmatpush.bf16.msrb.mxu3 %v4002_v19  ;;  %v4932_v59 = vld [vmem:[%s5502_s4 + $0x124] sm:$0xf] }
 0x761   : > { %v4190_v2 = vor.u32 %v4932_v59, %v4187_v60  ;;  %v4916_v19 = vld [vmem:[%s5502_s4 + $0x24] sm:$0xf]  ;;  %v4926_v59 = vld [vmem:[%s5502_s4 + $0xb4] sm:$0xf] }
 0x762   : > { %v4126_v27 = vor.u32 %v4916_v19, %v4123_v20  ;;  %v4171_v60 = vld [vmem:[%s5502_s4 + $0xf0] sm:$0xf0]  ;;  %v4955_v19 = vld [vmem:[%s5517_s6 + $0x238] sm:$0xff] }
 0x763   : > { %1801 = vmatpush.bf16.msrb.mxu2 %v4038_v8  ;;  %v4924_v8 = vld [vmem:[%s5502_s4 + $0xa4] sm:$0xf]  ;;  %v4963_v20 = vld [vmem:[%s5517_s6 + $0x278] sm:$0xff] }
 0x764   : > { %1815 = vmatpush.bf16.msrb.mxu0 %v4042_v9  ;;  %v4155_v9 = vld [vmem:[%s5502_s4 + $0xe0] sm:$0xf0] }
 0x7c5   : > { %v1471_v15 = vpop.xlane.xlu1 %1470 }
 0x7c6   : > { %v1475_v17 = vmul.f32 %v1471_v15, %v5618_v32  ;;  %v4003_v15 = vld [vmem:[%s5502_s4 + $0x50] sm:$0xf0] }
 0x7c7   : > { %v4006_v23 = vor.u32 %v4822_v14, %v4003_v15  ;;  %v4158_v14 = vor.u32 %v4924_v8, %v4155_v9  ;;  %v4121_v15 = vld [vmem:[%s5502_s4 + $0x20] sm:$0xf]  ;;  %v4918_v8 = vld [vmem:[%s5502_s4 + $0x34] sm:$0xf] }
 0x7c8   : > { %v5663_v25 = vadd.f32 1e-05, %v1475_v17  ;;  %v4009_v17 = vld [vmem:[%s5502_s4 + $0x18] sm:$0xf]  ;;  %v4139_v9 = vld [vmem:[%s5502_s4 + $0x70] sm:$0xf0] }
 0x7c9   : > { %v4010_v24 = vor.u32 %v4827_v18, %v4009_v17  ;;  %1802 = vmatpush.bf16.msrb.mxu2 %v4006_v23  ;;  %v4162_v17 = vor.u32 %v4929_v11, %v4161_v10  ;;  %v4166_v18 = vor.u32 %v4925_v12, %v4163_v7  ;;  %v4917_v23 = vld [vmem:[%s5502_s4 + $0x2c] sm:$0xf]  ;;  %v4145_v10 = vld [vmem:[%s5502_s4 + $0x38] sm:$0xf]  ;;  %v4919_v12 = vld [vmem:[%s5502_s4 + $0x3c] sm:$0xf] }
 0x7ca   : > { %5126 = vrsqrt.f32 %v5663_v25  ;;  %vm1485_vm11 = vweird.f32 %v5663_v25  ;;  %v4923_v11 = vld [vmem:[%s5502_s4 + $0x74] sm:$0xf0]  ;;  %v4147_v7 = vld [vmem:[%s5502_s4 + $0x78] sm:$0xf0] }
 0x7cb   : > { %1816 = vmatpush.bf16.msrb.mxu0 %v4010_v24  ;;  %v4131_v24 = vld [vmem:[%s5502_s4 + $0x68] sm:$0xf0] }
 0x7cd   : > { %v1474_v38 = vpop.xlane.xlu0 %1473 }
 0x7ce   : > { %v1476_v45 = vmul.f32 %v1474_v38, %v5618_v32 }
 0x7d0   : > { %v5127_v57 = vpop.eup %5126  ;;  %v1478_v58 = vadd.f32 1e-05, %v1476_v45  ;;  %v4225_v45 = vld [vmem:[%s5502_s4 + $0x1a8] sm:$0xf] }
 0x7d1   : > { %v1480_v62 = vmul.f32 %v5127_v57, %v5663_v25  ;;  %vm1486_vm10 = vweird.f32 %v5127_v57  ;;  %v5103_v25 = vld [vmem:[%s1015_s19] ss:$0 sm:$0xff]  ;;  %s6221_s19 = sld [smem:[#allocation39_spill]] (!%p4767_p1) }
 0x7d2   : > { %5128 = vrsqrt.f32 %v1478_v58  ;;  %vm1487_vm12 = vmor %vm1485_vm11, %vm1486_vm10  ;;  %vm1495_vm14 = vweird.f32 %v1478_v58 }
 0x7d3   : > { %v1481_v6 = vmul.f32 %v5127_v57, %v1480_v62  ;;  %v4937_v62 = vld [vmem:[%s5502_s4 + $0x164] sm:$0xf0] }
 0x7d4   : > { %v4194_v5 = vor.u32 %v4937_v62, %v4193_v61  ;;  %v4177_v61 = vld [vmem:[%s5502_s4 + $0xb8] sm:$0xf] }
 0x7d5   : > { %v1482_v16 = vmul.f32 0.5, %v1481_v6  ;;  %v4198_v6 = vor.u32 %v4933_v63, %v4195_v0  ;;  %v4931_v62 = vld [vmem:[%s5502_s4 + $0xf4] sm:$0xf0]  ;;  %v4927_v63 = vld [vmem:[%s5502_s4 + $0xbc] sm:$0xf] }
 0x7d6   : > { %v4179_v0 = vld [vmem:[%s5502_s4 + $0xf8] sm:$0xf0] }
 0x7d7   : > { %v1483_v22 = vsub.f32 1.5, %v1482_v16  ;;  %v4920_v16 = vld [vmem:[%s5502_s4 + $0x5c] sm:$0xf0] }
 0x7d8   : > { %v5129_v26 = vpop.eup %5128 }
 0x7d9   : > { %v1484_v28 = vmul.f32 %v5127_v57, %v1483_v22  ;;  %v1490_v29 = vmul.f32 %v5129_v26, %v1478_v58  ;;  %vm1496_vm13 = vweird.f32 %v5129_v26  ;;  %v4921_v22 = vld [vmem:[%s5502_s4 + $0x64] sm:$0xf0] }
 0x7da   : > { %vm1497_vm15 = vmor %vm1495_vm14, %vm1496_vm13 }
 0x7db   : > { %v1491_v30 = vmul.f32 %v5129_v26, %v1490_v29  ;;  %v1488_v31 = vsel %vm1487_vm12, %v5127_v57, %v1484_v28  ;;  %v4226_v57 = vor.u32 %v4945_v48, %v4225_v45  ;;  %v4233_v28 = vld [vmem:[%s5502_s4 + $0x1b0] sm:$0xf]  ;;  %v4209_v45 = vld [vmem:[%s5502_s4 + $0x138] sm:$0xf] }
 0x7dc   : > { %v1499_v50 = vmul.f32 %v1488_v31, %v5621_v34  ;;  %v4944_v34 = vld [vmem:[%s5502_s4 + $0x1dc] sm:$0xf0]  ;;  %v4946_v29 = vld [vmem:[%s5502_s4 + $0x1ec] sm:$0xf0]  ;;  %v4134_v31 = vor.u32 %v4917_v23, %v4131_v24  ;;  %v4939_v48 = vld [vmem:[%s5502_s4 + $0x174] sm:$0xf0] }
 0x7dd   : > { %v1492_v49 = vmul.f32 0.5, %v1491_v30  ;;  %v4218_v53 = vor.u32 %v4944_v34, %v4217_v42  ;;  %v4130_v30 = vor.u32 %v4921_v22, %v4129_v21  ;;  %v4970_v21 = vld [vmem:[%s5517_s6 + $0x2b0] sm:$0xff] }
 0x7de   : > { %v1504_v38 = vmul.f32 %v5103_v25, %v1499_v50  ;;  %v4947_v50 = vld [vmem:[%s5502_s4 + $0x1f4] sm:$0xf0]  ;;  %v4978_v22 = vld [vmem:[%s5517_s6 + $0x2f0] sm:$0xff] }
 0x7df   : > { %v1493_v33 = vsub.f32 1.5, %v1492_v49  ;;  %v4942_v49 = vld [vmem:[%s5502_s4 + $0x1b4] sm:$0xf] }
 0x7e0   : > { %v5720_v46 = vadd.f32 %v5104_v37, %v1504_v38  ;;  %v4954_v23 = vld [vmem:[%s5517_s6 + $0x230] sm:$0xff] }
 0x7e1   : > { %v1494_v35 = vmul.f32 %v5129_v26, %v1493_v33  ;;  %v4235_v33 = vld [vmem:[%s5502_s4 + $0x1f0] sm:$0xf0] }
 0x7e2   : > { %v4238_v38 = vor.u32 %v4942_v49, %v4235_v33  ;;  %v4962_v24 = vld [vmem:[%s5517_s6 + $0x270] sm:$0xff]  ;;  %v4967_v49 = vld [vmem:[%s5517_s6 + $0x298] sm:$0xff] }
 0x7e3   : > { %v1498_v36 = vsel %vm1497_vm15, %v5129_v26, %v1494_v35  ;;  %v4122_v26 = vor.u32 %v4920_v16, %v4121_v15  ;;  %v4943_v35 = vld [vmem:[%s5502_s4 + $0x1bc] sm:$0xf]  ;;  %v4146_v15 = vor.u32 %v4923_v11, %v4145_v10  ;;  %v4150_v16 = vor.u32 %v4919_v12, %v4147_v7  ;;  %v4998_v12 = vld [vmem:[%s5517_s6 + $0x390] sm:$0xff] }
 0x7e4   : > { %v1500_v40 = vmul.f32 %v1498_v36, %v5627_v39  ;;  %v4227_v39 = vld [vmem:[%s5502_s4 + $0x1e8] sm:$0xf0]  ;;  %v4243_v36 = vld [vmem:[%s5502_s4 + $0x1f8] sm:$0xf0]  ;;  %v5006_v7 = vld [vmem:[%s5517_s6 + $0x3d0] sm:$0xff] }
 0x7e5   : > { %v4230_v58 = vor.u32 %v4941_v51, %v4227_v39  ;;  %v4246_v34 = vor.u32 %v4943_v35, %v4243_v36  ;;  %v4935_v51 = vld [vmem:[%s5502_s4 + $0x13c] sm:$0xf]  ;;  %v4974_v35 = vld [vmem:[%s5517_s6 + $0x2d0] sm:$0xff] }
 0x7e6   : > { %v1505_v41 = vmul.f32 %v5103_v25, %v1500_v40  ;;  %v4241_v25 = vld [vmem:[%s5502_s4 + $0x1b8] sm:$0xf]  ;;  %v4201_v40 = vld [vmem:[%s5502_s4 + $0x130] sm:$0xf]  ;;  %v4211_v39 = vld [vmem:[%s5502_s4 + $0x178] sm:$0xf0] }
 0x7e7   : > { %v4242_v42 = vor.u32 %v4947_v50, %v4241_v25  ;;  %v4975_v33 = vld [vmem:[%s5517_s6 + $0x2d8] sm:$0xff]  ;;  %v4952_v25 = vld [vmem:[%s5517_s6 + $0x220] sm:$0xff]  ;;  %v4966_v50 = vld [vmem:[%s5517_s6 + $0x290] sm:$0xff] }
 0x7e8   : > { %v5722_v47 = vadd.f32 %v5104_v37, %v1505_v41  ;;  %v4234_v37 = vor.u32 %v4946_v29, %v4233_v28  ;;  %v4938_v41 = vld [vmem:[%s5502_s4 + $0x16c] sm:$0xf0]  ;;  %v4968_v28 = vld [vmem:[%s5517_s6 + $0x2a0] sm:$0xff]  ;;  %v4951_v36 = vld [vmem:[%s5517_s6 + $0x218] sm:$0xff] }
 0x7e9   : > { %v4976_v29 = vld [vmem:[%s5517_s6 + $0x2e0] sm:$0xff] }
 0x7ea   : > { %v5729_v52 = vpack.c.bf16 %v5722_v47, %v5720_v46 }
 0x7ec   : > { %4111 = vmatmul.msk.bf16.vlgmr.msra.gmra.mxu3 %vm1188_vm6, %v5729_v52  ;;  %4112 = vmatmul.msk.bf16.vlgmr.msra.gmra.mxu2 %vm1188_vm6, %v5729_v52 }
 0x7ed   : > { %4113 = vmatmul.msk.bf16.vlgmr.msra.gmra.mxu0 %vm1188_vm6, %v5729_v52  ;;  %4114 = vmatmul.msk.bf16.vlgmr.msra.gmra.mxu1 %vm1188_vm6, %v5729_v52 }
 0x7ee   : > { %2203 = vmatpush.bf16.msra.mxu3 %v4218_v53  ;;  %2217 = vmatpush.bf16.msra.mxu2 %v4222_v54  ;;  %v4202_v53 = vor.u32 %v4938_v41, %v4201_v40  ;;  %v4206_v54 = vor.u32 %v4934_v43, %v4203_v44  ;;  %v4973_v40 = vld [vmem:[%s5517_s6 + $0x2c8] sm:$0xff]  ;;  %v4950_v41 = vld [vmem:[%s5517_s6 + $0x210] sm:$0xff]  ;;  %v4972_v43 = vld [vmem:[%s5517_s6 + $0x2c0] sm:$0xff] }
 0x7ef   : > { %2231 = vmatpush.bf16.msra.mxu0 %v4226_v57  ;;  %2245 = vmatpush.bf16.msra.mxu1 %v4230_v58  ;;  %v4210_v57 = vor.u32 %v4939_v48, %v4209_v45  ;;  %v4214_v58 = vor.u32 %v4935_v51, %v4211_v39  ;;  %v5003_v44 = vld [vmem:[%s5517_s6 + $0x3b8] sm:$0xff]  ;;  %v4949_v48 = vld [vmem:[%s5517_s6 + $0x208] sm:$0xff]  ;;  %v5002_v39 = vld [vmem:[%s5517_s6 + $0x3b0] sm:$0xff] }
 0x7f0   : > { %v5011_v45 = vld [vmem:[%s5517_s6 + $0x3f8] sm:$0xff]  ;;  %v4957_v51 = vld [vmem:[%s5517_s6 + $0x248] sm:$0xff] }
 0x7f2   : > { %2204 = vmatpush.bf16.msra.mxu3 %v4186_v1  ;;  %2218 = vmatpush.bf16.msra.mxu2 %v4190_v2  ;;  %v4170_v1 = vor.u32 %v4930_v56, %v4169_v55  ;;  %v4174_v2 = vor.u32 %v4926_v59, %v4171_v60  ;;  %v4956_v55 = vld [vmem:[%s5517_s6 + $0x240] sm:$0xff]  ;;  %v4987_v56 = vld [vmem:[%s5517_s6 + $0x338] sm:$0xff]  ;;  %v5009_v59 = vld [vmem:[%s5517_s6 + $0x3e8] sm:$0xff] }
 0x7f3   : > { %2232 = vmatpush.bf16.msra.mxu0 %v4194_v5  ;;  %2246 = vmatpush.bf16.msra.mxu1 %v4198_v6  ;;  %v4178_v5 = vor.u32 %v4931_v62, %v4177_v61  ;;  %v4182_v6 = vor.u32 %v4927_v63, %v4179_v0  ;;  %v4986_v60 = vld [vmem:[%s5517_s6 + $0x330] sm:$0xff]  ;;  %v5000_v62 = vld [vmem:[%s5517_s6 + $0x3a0] sm:$0xff]  ;;  %v4985_v0 = vld [vmem:[%s5517_s6 + $0x328] sm:$0xff] }
 0x7f4   : > { %v4994_v61 = vld [vmem:[%s5517_s6 + $0x370] sm:$0xff]  ;;  %v5008_v63 = vld [vmem:[%s5517_s6 + $0x3e0] sm:$0xff] }
 0x7f6   : > { %2205 = vmatpush.bf16.msra.mxu3 %v4154_v13  ;;  %2219 = vmatpush.bf16.msra.mxu2 %v4158_v14  ;;  %v4138_v13 = vor.u32 %v4922_v4, %v4137_v3  ;;  %v4142_v14 = vor.u32 %v4918_v8, %v4139_v9  ;;  %v4984_v8 = vld [vmem:[%s5517_s6 + $0x320] sm:$0xff] }
 0x7f7   : > { %2233 = vmatpush.bf16.msra.mxu0 %v4162_v17  ;;  %2247 = vmatpush.bf16.msra.mxu1 %v4166_v18  ;;  %v4971_v17 = vld [vmem:[%s5517_s6 + $0x2b8] sm:$0xff]  ;;  %v4992_v9 = vld [vmem:[%s5517_s6 + $0x360] sm:$0xff] }
 0x7f8   : > { %v4979_v18 = vld [vmem:[%s5517_s6 + $0x2f8] sm:$0xff] }
 0x7fa   : > { %2206 = vmatpush.bf16.msra.mxu3 %v4122_v26  ;;  %2220 = vmatpush.bf16.msra.mxu2 %v4126_v27  ;;  %v4969_v26 = vld [vmem:[%s5517_s6 + $0x2a8] sm:$0xff] }
 0x7fb   : > { %2234 = vmatpush.bf16.msra.mxu0 %v4130_v30  ;;  %2248 = vmatpush.bf16.msra.mxu1 %v4134_v31  ;;  %v4977_v27 = vld [vmem:[%s5517_s6 + $0x2e8] sm:$0xff] }
 0x7fc   : > { %4115 = vmatmul.msk.bf16.vlgmr.msrb.gmra.mxu3 %vm1188_vm6, %v5729_v52  ;;  %4116 = vmatmul.msk.bf16.vlgmr.msrb.gmra.mxu2 %vm1188_vm6, %v5729_v52  ;;  %v4953_v30 = vld [vmem:[%s5517_s6 + $0x228] sm:$0xff] }
 0x7fd   : > { %4117 = vmatmul.msk.bf16.vlgmr.msrb.gmra.mxu0 %vm1188_vm6, %v5729_v52  ;;  %4118 = vmatmul.msk.bf16.vlgmr.msrb.gmra.mxu1 %vm1188_vm6, %v5729_v52  ;;  %v4961_v31 = vld [vmem:[%s5517_s6 + $0x268] sm:$0xff] }
 0x7fe   : > { %2259 = vmatpush.bf16.msrb.mxu3 %v4234_v37  ;;  %2273 = vmatpush.bf16.msrb.mxu2 %v4238_v38  ;;  %v4959_v37 = vld [vmem:[%s5517_s6 + $0x258] sm:$0xff]  ;;  %v4965_v38 = vld [vmem:[%s5517_s6 + $0x288] sm:$0xff] }
 0x7ff   : > { %2287 = vmatpush.bf16.msrb.mxu0 %v4242_v42  ;;  %2301 = vmatpush.bf16.msrb.mxu1 %v4246_v34  ;;  %v4958_v42 = vld [vmem:[%s5517_s6 + $0x250] sm:$0xff]  ;;  %v4964_v34 = vld [vmem:[%s5517_s6 + $0x280] sm:$0xff] }
 0x802   : > { %2260 = vmatpush.bf16.msrb.mxu3 %v4202_v53  ;;  %2274 = vmatpush.bf16.msrb.mxu2 %v4206_v54  ;;  %v5010_v53 = vld [vmem:[%s5517_s6 + $0x3f0] sm:$0xff]  ;;  %v4948_v54 = vld [vmem:[%s5517_s6 + $0x200] sm:$0xff] }
 0x803   : > { %2288 = vmatpush.bf16.msrb.mxu0 %v4210_v57  ;;  %2302 = vmatpush.bf16.msrb.mxu1 %v4214_v58  ;;  %v4995_v57 = vld [vmem:[%s5517_s6 + $0x378] sm:$0xff]  ;;  %v5001_v58 = vld [vmem:[%s5517_s6 + $0x3a8] sm:$0xff] }
 0x806   : > { %2261 = vmatpush.bf16.msrb.mxu3 %v4170_v1  ;;  %2275 = vmatpush.bf16.msrb.mxu2 %v4174_v2  ;;  %v4993_v1 = vld [vmem:[%s5517_s6 + $0x368] sm:$0xff]  ;;  %v5866_v2 = vld [vmem:[%s5507_s10] sm:$0xff] }
 0x807   : > { %2289 = vmatpush.bf16.msrb.mxu0 %v4178_v5  ;;  %2303 = vmatpush.bf16.msrb.mxu1 %v4182_v6  ;;  %v4999_v5 = vld [vmem:[%s5517_s6 + $0x398] sm:$0xff]  ;;  %v1548_v10 = vperm.slane %v5866_v2, 2  ;;  %v1549_v11 = vperm.slane %v5866_v2, 3 }
 0x808   : > { %v5007_v6 = vld [vmem:[%s5517_s6 + $0x3d8] sm:$0xff] }
 0x80a   : > { %2262 = vmatpush.bf16.msrb.mxu3 %v4138_v13  ;;  %2276 = vmatpush.bf16.msrb.mxu2 %v4142_v14 }
 0x80b   : > { %2290 = vmatpush.bf16.msrb.mxu0 %v4146_v15  ;;  %2304 = vmatpush.bf16.msrb.mxu1 %v4150_v16  ;;  %v4983_v15 = vld [vmem:[%s5517_s6 + $0x318] sm:$0xff] }
 0x80c   : > { %4247 = vmatmul.msk.bf16.vlgmr.msra.gmra.mxu3 %vm1188_vm6, %v5729_v52  ;;  %4248 = vmatmul.msk.bf16.vlgmr.msra.gmra.mxu2 %vm1188_vm6, %v5729_v52  ;;  %v4991_v16 = vld [vmem:[%s5517_s6 + $0x358] sm:$0xff] }
 0x80d   : > { %4249 = vmatmul.msk.bf16.vlgmr.msra.gmra.mxu0 %vm1188_vm6, %v5729_v52  ;;  %4250 = vmatmul.msk.bf16.vlgmr.msra.gmra.mxu1 %vm1188_vm6, %v5729_v52 }
 0x80e   : > { %2847 = vmatpush.bf16.msra.mxu3 %v4955_v19  ;;  %2861 = vmatpush.bf16.msra.mxu2 %v4963_v20  ;;  %v1546_v19 = vperm.slane %v5866_v2, 0  ;;  %v1547_v20 = vperm.slane %v5866_v2, 1 }
 0x80f   : > { %2875 = vmatpush.bf16.msra.mxu0 %v4971_v17  ;;  %2889 = vmatpush.bf16.msra.mxu1 %v4979_v18 }
 0x812   : > { %2848 = vmatpush.bf16.msra.mxu3 %v4954_v23  ;;  %2862 = vmatpush.bf16.msra.mxu2 %v4962_v24  ;;  %v4997_v23 = vld [vmem:[%s5517_s6 + $0x388] sm:$0xff] }
 0x813   : > { %2876 = vmatpush.bf16.msra.mxu0 %v4970_v21  ;;  %2890 = vmatpush.bf16.msra.mxu1 %v4978_v22  ;;  %v5005_v24 = vld [vmem:[%s5517_s6 + $0x3c8] sm:$0xff] }
 0x816   : > { %2849 = vmatpush.bf16.msra.mxu3 %v4953_v30  ;;  %2863 = vmatpush.bf16.msra.mxu2 %v4961_v31 }
 0x817   : > { %2877 = vmatpush.bf16.msra.mxu0 %v4969_v26  ;;  %2891 = vmatpush.bf16.msra.mxu1 %v4977_v27 }
 0x81a   : > { %2850 = vmatpush.bf16.msra.mxu3 %v4952_v25 }
 0x81b   : > { %2878 = vmatpush.bf16.msra.mxu0 %v4968_v28  ;;  %2892 = vmatpush.bf16.msra.mxu1 %v4976_v29  ;;  %v4982_v28 = vld [vmem:[%s5517_s6 + $0x310] sm:$0xff] }
 0x81c   : > { %4251 = vmatmul.msk.bf16.vlgmr.msrb.gmra.mxu3 %vm1188_vm6, %v5729_v52  ;;  %4252 = vmatmul.msk.bf16.vlgmr.msrb.gmra.mxu2 %vm1188_vm6, %v5729_v52  ;;  %v4990_v29 = vld [vmem:[%s5517_s6 + $0x350] sm:$0xff] }
 0x81d   : > { %4253 = vmatmul.msk.bf16.vlgmr.msrb.gmra.mxu0 %vm1188_vm6, %v5729_v52  ;;  %4254 = vmatmul.msk.bf16.vlgmr.msrb.gmra.mxu1 %vm1188_vm6, %v5729_v52  ;;  %v4960_v52 = vld [vmem:[%s5517_s6 + $0x260] sm:$0xff] }
 0x81e   : > { %2864 = vmatpush.bf16.msra.mxu2 %v4960_v52  ;;  %2851 = vmatpush.bf16.msra.mxu3 %v4951_v36 }
 0x81f   : > { %2879 = vmatpush.bf16.msra.mxu0 %v4967_v49  ;;  %2893 = vmatpush.bf16.msra.mxu1 %v4975_v33 }
 0x822   : > { %2865 = vmatpush.bf16.msra.mxu2 %v4959_v37  ;;  %2852 = vmatpush.bf16.msra.mxu3 %v4950_v41 }
 0x823   : > { %2880 = vmatpush.bf16.msra.mxu0 %v4966_v50  ;;  %2894 = vmatpush.bf16.msra.mxu1 %v4974_v35  ;;  %v4996_v50 = vld [vmem:[%s5517_s6 + $0x380] sm:$0xff] }
 0x824   : > { %v5004_v35 = vld [vmem:[%s5517_s6 + $0x3c0] sm:$0xff] }
 0x826   : > { %2866 = vmatpush.bf16.msra.mxu2 %v4958_v42  ;;  %2853 = vmatpush.bf16.msra.mxu3 %v4949_v48 }
 0x827   : > { %2881 = vmatpush.bf16.msra.mxu0 %v4965_v38  ;;  %2895 = vmatpush.bf16.msra.mxu1 %v4973_v40 }
 0x82a   : > { %2867 = vmatpush.bf16.msra.mxu2 %v4957_v51  ;;  %2854 = vmatpush.bf16.msra.mxu3 %v4948_v54 }
 0x82b   : > { %2882 = vmatpush.bf16.msra.mxu0 %v4964_v34  ;;  %2896 = vmatpush.bf16.msra.mxu1 %v4972_v43  ;;  %v4981_v34 = vld [vmem:[%s5517_s6 + $0x308] sm:$0xff] }
 0x82c   : > { %v4989_v43 = vld [vmem:[%s5517_s6 + $0x348] sm:$0xff] }
 0x82e   : > { %2868 = vmatpush.bf16.msra.mxu2 %v4956_v55  ;;  %2903 = vmatpush.bf16.msrb.mxu3 %v4987_v56  ;;  %v1552_v56 = vperm.slane %v5866_v2, 6 }
 0x82f   : > { %2931 = vmatpush.bf16.msrb.mxu0 %v5003_v44  ;;  %2945 = vmatpush.bf16.msrb.mxu1 %v5011_v45 }
 0x832   : > { %2917 = vmatpush.bf16.msrb.mxu2 %v4995_v57  ;;  %2904 = vmatpush.bf16.msrb.mxu3 %v4986_v60  ;;  %v1553_v57 = vperm.slane %v5866_v2, 7 }
 0x833   : > { %2932 = vmatpush.bf16.msrb.mxu0 %v5002_v39  ;;  %2946 = vmatpush.bf16.msrb.mxu1 %v5010_v53 }
 0x836   : > { %2918 = vmatpush.bf16.msrb.mxu2 %v4994_v61  ;;  %2905 = vmatpush.bf16.msrb.mxu3 %v4985_v0  ;;  %v1550_v0 = vperm.slane %v5866_v2, 4 }
 0x837   : > { %2933 = vmatpush.bf16.msrb.mxu0 %v5001_v58  ;;  %2947 = vmatpush.bf16.msrb.mxu1 %v5009_v59  ;;  %v4980_v58 = vld [vmem:[%s5517_s6 + $0x300] sm:$0xff] }
 0x838   : > { %v4988_v59 = vld [vmem:[%s5517_s6 + $0x340] sm:$0xff] }
 0x83a   : > { %2919 = vmatpush.bf16.msrb.mxu2 %v4993_v1  ;;  %2906 = vmatpush.bf16.msrb.mxu3 %v4984_v8  ;;  %v1551_v1 = vperm.slane %v5866_v2, 5 }
 0x83b   : > { %2934 = vmatpush.bf16.msrb.mxu0 %v5000_v62  ;;  %2948 = vmatpush.bf16.msrb.mxu1 %v5008_v63 }
 0x83e   : > { %2920 = vmatpush.bf16.msrb.mxu2 %v4992_v9  ;;  %2907 = vmatpush.bf16.msrb.mxu3 %v4983_v15 }
 0x83f   : > { %2935 = vmatpush.bf16.msrb.mxu0 %v4999_v5  ;;  %2949 = vmatpush.bf16.msrb.mxu1 %v5007_v6 }
 0x842   : > { %2921 = vmatpush.bf16.msrb.mxu2 %v4991_v16  ;;  %2908 = vmatpush.bf16.msrb.mxu3 %v4982_v28 }
 0x843   : > { %2936 = vmatpush.bf16.msrb.mxu0 %v4998_v12  ;;  %2950 = vmatpush.bf16.msrb.mxu1 %v5006_v7 }
 0x846   : > { %2922 = vmatpush.bf16.msrb.mxu2 %v4990_v29  ;;  %2909 = vmatpush.bf16.msrb.mxu3 %v4981_v34 }
 0x847   : > { %2937 = vmatpush.bf16.msrb.mxu0 %v4997_v23  ;;  %2951 = vmatpush.bf16.msrb.mxu1 %v5005_v24 }
 0x84a   : > { %2923 = vmatpush.bf16.msrb.mxu2 %v4989_v43  ;;  %2910 = vmatpush.bf16.msrb.mxu3 %v4980_v58 }
 0x84b   : > { %2938 = vmatpush.bf16.msrb.mxu0 %v4996_v50  ;;  %2952 = vmatpush.bf16.msrb.mxu1 %v5004_v35 }
 0x84e   : > { %2924 = vmatpush.bf16.msrb.mxu2 %v4988_v59 }
 0x86a   : > { %v1762_v3 = vpop.f32.mrf.mxu0  ;;  %v1776_v4 = vpop.f32.mrf.mxu1 }
 0x86b   : > { %v1763_v17 = vadd.f32 %v1762_v3, %v1548_v10  ;;  %v1777_v18 = vadd.f32 %v1776_v4, %v1549_v11 }
 0x86d   : > { %v1839_v30 = vmax.f32 %v1763_v17, 0.0  ;;  %v1840_v31 = vmax.f32 %v1777_v18, 0.0 }
 0x86f   : > { %v1734_v13 = vpop.f32.mrf.mxu3  ;;  %v1748_v14 = vpop.f32.mrf.mxu2 }
 0x870   : > { %v1735_v25 = vadd.f32 %v1734_v13, %v1546_v19  ;;  %v1749_v52 = vadd.f32 %v1748_v14, %v1547_v20 }
 0x872   : > { %v1764_v21 = vpop.f32.mrf.mxu0  ;;  %v1778_v22 = vpop.f32.mrf.mxu1  ;;  %v1837_v44 = vmax.f32 %v1735_v25, 0.0  ;;  %v1838_v45 = vmax.f32 %v1749_v52, 0.0 }
 0x873   : > { %v1765_v26 = vadd.f32 %v1764_v21, %v1548_v10  ;;  %v1779_v27 = vadd.f32 %v1778_v22, %v1549_v11  ;;  %v5907_v22 = vld [vmem:[%s5507_s10 + $0x8] sm:$0xff]  ;;  %s6213_s10 = scalar_lea.vmem %s6124_s16, %s5457_s0 }
 0x874   : > { %v2025_v28 = vperm.slane %v5907_v22, 2  ;;  %v2026_v29 = vperm.slane %v5907_v22, 3  ;;  %v2023_v25 = vperm.slane %v5907_v22, 0  ;;  %v2024_v52 = vperm.slane %v5907_v22, 1 }
 0x875   : > { %v1847_v49 = vmax.f32 %v1765_v26, 0.0  ;;  %v1848_v33 = vmax.f32 %v1779_v27, 0.0 }
 0x877   : > { %v5886_v36 = vpack.c.bf16 %v1847_v49, %v1839_v30  ;;  %v5888_v37 = vpack.c.bf16 %v1848_v33, %v1840_v31  ;;  %v1736_v38 = vpop.f32.mrf.mxu3  ;;  %v1750_v40 = vpop.f32.mrf.mxu2 }
 0x878   : > { %v1737_v41 = vadd.f32 %v1736_v38, %v1546_v19  ;;  %v1751_v42 = vadd.f32 %v1750_v40, %v1547_v20 }
 0x87a   : > { %v1845_v48 = vmax.f32 %v1737_v41, 0.0  ;;  %v1846_v51 = vmax.f32 %v1751_v42, 0.0  ;;  %v1818_v39 = vpop.f32.mrf.mxu0  ;;  %v1832_v53 = vpop.f32.mrf.mxu1 }
 0x87b   : > { %v1819_v62 = vadd.f32 %v1818_v39, %v1552_v56  ;;  %v1833_v63 = vadd.f32 %v1832_v53, %v1553_v57 }
 0x87c   : > { %v5892_v54 = vpack.c.bf16 %v1845_v48, %v1837_v44  ;;  %v5894_v55 = vpack.c.bf16 %v1846_v51, %v1838_v45  ;;  %v4875_v48 = vld [vmem:[%s5517_s6 + $0xb8] sm:$0xff] }
 0x87d   : > { %v1843_v8 = vmax.f32 %v1819_v62, 0.0  ;;  %v1844_v9 = vmax.f32 %v1833_v63, 0.0  ;;  %v4883_v51 = vld [vmem:[%s5517_s6 + $0xf8] sm:$0xff] }
 0x87f   : > { %v1790_v60 = vpop.f32.mrf.mxu3  ;;  %v1804_v61 = vpop.f32.mrf.mxu2 }
 0x880   : > { %v1791_v12 = vadd.f32 %v1790_v60, %v1550_v0  ;;  %v1805_v7 = vadd.f32 %v1804_v61, %v1551_v1 }
 0x882   : > { %v1820_v3 = vpop.f32.mrf.mxu0  ;;  %v1834_v4 = vpop.f32.mrf.mxu1  ;;  %v1841_v2 = vmax.f32 %v1791_v12, 0.0  ;;  %v1842_v19 = vmax.f32 %v1805_v7, 0.0  ;;  %v4873_v12 = vld [vmem:[%s5517_s6 + $0xa8] sm:$0xff] }
 0x883   : > { %v1821_v5 = vadd.f32 %v1820_v3, %v1552_v56  ;;  %v1835_v6 = vadd.f32 %v1834_v4, %v1553_v57  ;;  %v4874_v3 = vld [vmem:[%s5517_s6 + $0xb0] sm:$0xff]  ;;  %v4881_v7 = vld [vmem:[%s5517_s6 + $0xe8] sm:$0xff] }
 0x884   : > { %v4882_v4 = vld [vmem:[%s5517_s6 + $0xf0] sm:$0xff] }
 0x885   : > { %v1851_v10 = vmax.f32 %v1821_v5, 0.0  ;;  %v1852_v11 = vmax.f32 %v1835_v6, 0.0 }
 0x887   : > { %v5902_v13 = vpack.c.bf16 %v1851_v10, %v1843_v8  ;;  %v5904_v14 = vpack.c.bf16 %v1852_v11, %v1844_v9  ;;  %v1792_v15 = vpop.f32.mrf.mxu3  ;;  %v1806_v16 = vpop.f32.mrf.mxu2  ;;  %v4859_v8 = vld [vmem:[%s5517_s6 + $0x38] sm:$0xff]  ;;  %v2029_v10 = vperm.slane %v5907_v22, 6  ;;  %v2030_v11 = vperm.slane %v5907_v22, 7 }
 0x888   : > { %v1793_v17 = vadd.f32 %v1792_v15, %v1550_v0  ;;  %v1807_v18 = vadd.f32 %v1806_v16, %v1551_v1  ;;  %v4867_v9 = vld [vmem:[%s5517_s6 + $0x78] sm:$0xff] }
 0x88a   : > { %v1849_v20 = vmax.f32 %v1793_v17, 0.0  ;;  %v1850_v21 = vmax.f32 %v1807_v18, 0.0  ;;  %v2236_v23 = vpop.f32.mrf.mxu0  ;;  %v2250_v24 = vpop.f32.mrf.mxu1  ;;  %v4858_v17 = vld [vmem:[%s5517_s6 + $0x30] sm:$0xff] }
 0x88b   : > { %v2237_v49 = vadd.f32 %v2236_v23, %v2025_v28  ;;  %v2251_v33 = vadd.f32 %v2250_v24, %v2026_v29  ;;  %v4866_v18 = vld [vmem:[%s5517_s6 + $0x70] sm:$0xff] }
 0x88c   : > { %v5909_v26 = vpack.c.bf16 %v1849_v20, %v1841_v2  ;;  %v5911_v27 = vpack.c.bf16 %v1850_v21, %v1842_v19  ;;  %v2027_v20 = vperm.slane %v5907_v22, 4  ;;  %v2028_v21 = vperm.slane %v5907_v22, 5 }
 0x88d   : > { %v2313_v41 = vmax.f32 %v2237_v49, 0.0  ;;  %v2314_v42 = vmax.f32 %v2251_v33, 0.0  ;;  %v4857_v49 = vld [vmem:[%s5517_s6 + $0x28] sm:$0xff] }
 0x88e   : > { %v4865_v33 = vld [vmem:[%s5517_s6 + $0x68] sm:$0xff] }
 0x88f   : > { %v2208_v30 = vpop.f32.mrf.mxu3  ;;  %v2222_v31 = vpop.f32.mrf.mxu2 }
 0x890   : > { %v2209_v44 = vadd.f32 %v2208_v30, %v2023_v25  ;;  %v2223_v45 = vadd.f32 %v2222_v31, %v2024_v52 }
 0x892   : > { %v2238_v50 = vpop.f32.mrf.mxu0  ;;  %v2252_v35 = vpop.f32.mrf.mxu1  ;;  %v2311_v60 = vmax.f32 %v2209_v44, 0.0  ;;  %v2312_v61 = vmax.f32 %v2223_v45, 0.0 }
 0x893   : > { %v2239_v38 = vadd.f32 %v2238_v50, %v2025_v28  ;;  %v2253_v40 = vadd.f32 %v2252_v35, %v2026_v29  ;;  %v4872_v28 = vld [vmem:[%s5517_s6 + $0xa0] sm:$0xff] }
 0x894   : > { %v4880_v29 = vld [vmem:[%s5517_s6 + $0xe0] sm:$0xff] }
 0x895   : > { %v2321_v34 = vmax.f32 %v2239_v38, 0.0  ;;  %v2322_v43 = vmax.f32 %v2253_v40, 0.0  ;;  %v4871_v40 = vld [vmem:[%s5517_s6 + $0x98] sm:$0xff] }
 0x897   : > { %v2329_v39 = vpack.c.bf16 %v2321_v34, %v2313_v41  ;;  %v2330_v53 = vpack.c.bf16 %v2322_v43, %v2314_v42  ;;  %v2210_v56 = vpop.f32.mrf.mxu3  ;;  %v2224_v57 = vpop.f32.mrf.mxu2  ;;  %v4879_v41 = vld [vmem:[%s5517_s6 + $0xd8] sm:$0xff] }
 0x898   : > { %v2211_v58 = vadd.f32 %v2210_v56, %v2023_v25  ;;  %v2225_v59 = vadd.f32 %v2224_v57, %v2024_v52 }
 0x899   : > { %2883 = vmatmul.bf16.vlgmr.msra.gmra.mxu0 %v2329_v39  ;;  %2897 = vmatmul.bf16.vlgmr.msra.gmra.mxu1 %v2330_v53  ;;  %v4864_v39 = vld [vmem:[%s5517_s6 + $0x60] sm:$0xff] }
 0x89a   : > { %v2319_v62 = vmax.f32 %v2211_v58, 0.0  ;;  %v2320_v63 = vmax.f32 %v2225_v59, 0.0  ;;  %3371 = vmatpush.bf16.msra.mxu0 %v4875_v48  ;;  %3385 = vmatpush.bf16.msra.mxu1 %v4883_v51  ;;  %v2292_v0 = vpop.f32.mrf.mxu0  ;;  %v2306_v1 = vpop.f32.mrf.mxu1  ;;  %v4856_v51 = vld [vmem:[%s5517_s6 + $0x20] sm:$0xff]  ;;  %v4870_v59 = vld [vmem:[%s5517_s6 + $0x90] sm:$0xff] }
 0x89b   : > { %v2293_v2 = vadd.f32 %v2292_v0, %v2029_v10  ;;  %v2307_v19 = vadd.f32 %v2306_v1, %v2030_v11  ;;  %v4863_v0 = vld [vmem:[%s5517_s6 + $0x58] sm:$0xff]  ;;  %v4869_v1 = vld [vmem:[%s5517_s6 + $0x88] sm:$0xff] }
 0x89c   : > { %v2327_v5 = vpack.c.bf16 %v2319_v62, %v2311_v60  ;;  %v2328_v6 = vpack.c.bf16 %v2320_v63, %v2312_v61  ;;  %v4878_v60 = vld [vmem:[%s5517_s6 + $0xd0] sm:$0xff]  ;;  %v4855_v63 = vld [vmem:[%s5517_s6 + $0x18] sm:$0xff] }
 0x89d   : > { %v2317_v25 = vmax.f32 %v2293_v2, 0.0  ;;  %v2318_v52 = vmax.f32 %v2307_v19, 0.0  ;;  %v4899_v2 = vld [vmem:[%s5517_s6 + $0x178] sm:$0xff]  ;;  %v4905_v19 = vld [vmem:[%s5517_s6 + $0x1a8] sm:$0xff] }
 0x89e   : > { %3372 = vmatpush.bf16.msra.mxu0 %v4874_v3  ;;  %3386 = vmatpush.bf16.msra.mxu1 %v4882_v4  ;;  %v4877_v3 = vld [vmem:[%s5517_s6 + $0xc8] sm:$0xff]  ;;  %v4854_v4 = vld [vmem:[%s5517_s6 + $0x10] sm:$0xff] }
 0x89f   : > { %2855 = vmatmul.bf16.vlgmr.msra.gmra.mxu3 %v2327_v5  ;;  %2869 = vmatmul.bf16.vlgmr.msra.gmra.mxu2 %v2328_v6  ;;  %v2264_v15 = vpop.f32.mrf.mxu3  ;;  %v2278_v16 = vpop.f32.mrf.mxu2  ;;  %v4862_v5 = vld [vmem:[%s5517_s6 + $0x50] sm:$0xff]  ;;  %v4868_v6 = vld [vmem:[%s5517_s6 + $0x80] sm:$0xff] }
 0x8a0   : > { %3343 = vmatpush.bf16.msra.mxu3 %v4859_v8  ;;  %3357 = vmatpush.bf16.msra.mxu2 %v4867_v9  ;;  %v2265_v22 = vadd.f32 %v2264_v15, %v2027_v20  ;;  %v2279_v38 = vadd.f32 %v2278_v16, %v2028_v21  ;;  %v4876_v8 = vld [vmem:[%s5517_s6 + $0xc0] sm:$0xff]  ;;  %v4907_v9 = vld [vmem:[%s5517_s6 + $0x1b8] sm:$0xff]  ;;  %v4914_v15 = vld [vmem:[%s5517_s6 + $0x1f0] sm:$0xff] }
 0x8a1   : > { %v4852_v16 = vld [vmem:[%s5517_s6] sm:$0xff] }
 0x8a2   : > { %3373 = vmatpush.bf16.msra.mxu0 %v4873_v12  ;;  %3387 = vmatpush.bf16.msra.mxu1 %v4881_v7  ;;  %v2294_v23 = vpop.f32.mrf.mxu0  ;;  %v2308_v24 = vpop.f32.mrf.mxu1  ;;  %v2315_v53 = vmax.f32 %v2265_v22, 0.0  ;;  %v2316_v56 = vmax.f32 %v2279_v38, 0.0  ;;  %v4861_v12 = vld [vmem:[%s5517_s6 + $0x48] sm:$0xff]  ;;  %v4906_v7 = vld [vmem:[%s5517_s6 + $0x1b0] sm:$0xff]  ;;  %v4900_v38 = vld [vmem:[%s5517_s6 + $0x180] sm:$0xff] }
 0x8a3   : > { %v2295_v30 = vadd.f32 %v2294_v23, %v2029_v10  ;;  %v2309_v31 = vadd.f32 %v2308_v24, %v2030_v11  ;;  %v4915_v10 = vld [vmem:[%s5517_s6 + $0x1f8] sm:$0xff]  ;;  %v4853_v11 = vld [vmem:[%s5517_s6 + $0x8] sm:$0xff]  ;;  %v4912_v23 = vld [vmem:[%s5517_s6 + $0x1e0] sm:$0xff] }
 0x8a4   : > { %3344 = vmatpush.bf16.msra.mxu3 %v4858_v17  ;;  %3358 = vmatpush.bf16.msra.mxu2 %v4866_v18  ;;  %v4860_v17 = vld [vmem:[%s5517_s6 + $0x40] sm:$0xff]  ;;  %v4891_v18 = vld [vmem:[%s5517_s6 + $0x138] sm:$0xff]  ;;  %v4889_v24 = vld [vmem:[%s5517_s6 + $0x128] sm:$0xff] }
 0x8a5   : > { %v2325_v50 = vmax.f32 %v2295_v30, 0.0  ;;  %v2326_v35 = vmax.f32 %v2309_v31, 0.0  ;;  %v4911_v30 = vld [vmem:[%s5517_s6 + $0x1d8] sm:$0xff]  ;;  %v4888_v31 = vld [vmem:[%s5517_s6 + $0x120] sm:$0xff]  ;;  %v4894_v22 = vld [vmem:[%s5517_s6 + $0x150] sm:$0xff] }
 0x8a6   : > { %3374 = vmatpush.bf16.msra.mxu0 %v4872_v28  ;;  %3388 = vmatpush.bf16.msra.mxu1 %v4880_v29  ;;  %v4897_v28 = vld [vmem:[%s5517_s6 + $0x168] sm:$0xff]  ;;  %v4903_v29 = vld [vmem:[%s5517_s6 + $0x198] sm:$0xff] }
 0x8a7   : > { %v2333_v42 = vpack.c.bf16 %v2325_v50, %v2317_v25  ;;  %v2334_v34 = vpack.c.bf16 %v2326_v35, %v2318_v52  ;;  %v2266_v43 = vpop.f32.mrf.mxu3  ;;  %v2280_v44 = vpop.f32.mrf.mxu2  ;;  %v4895_v25 = vld [vmem:[%s5517_s6 + $0x158] sm:$0xff]  ;;  %v4901_v52 = vld [vmem:[%s5517_s6 + $0x188] sm:$0xff]  ;;  %v4886_v35 = vld [vmem:[%s5517_s6 + $0x110] sm:$0xff] }
 0x8a8   : > { %3345 = vmatpush.bf16.msra.mxu3 %v4857_v49  ;;  %3359 = vmatpush.bf16.msra.mxu2 %v4865_v33  ;;  %v2267_v45 = vadd.f32 %v2266_v43, %v2027_v20  ;;  %v2281_v48 = vadd.f32 %v2280_v44, %v2028_v21  ;;  %v4913_v20 = vld [vmem:[%s5517_s6 + $0x1e8] sm:$0xff]  ;;  %v4890_v21 = vld [vmem:[%s5517_s6 + $0x130] sm:$0xff]  ;;  %v4887_v33 = vld [vmem:[%s5517_s6 + $0x118] sm:$0xff] }
 0x8a9   : > { %2939 = vmatmul.bf16.vlgmr.msrb.gmra.mxu0 %v2333_v42  ;;  %2953 = vmatmul.bf16.vlgmr.msrb.gmra.mxu1 %v2334_v34  ;;  %v4910_v49 = vld [vmem:[%s5517_s6 + $0x1d0] sm:$0xff]  ;;  %v4909_v50 = vld [vmem:[%s5517_s6 + $0x1c8] sm:$0xff]  ;;  %v4884_v34 = vld [vmem:[%s5517_s6 + $0x100] sm:$0xff] }
 0x8aa   : > { %v2323_v57 = vmax.f32 %v2267_v45, 0.0  ;;  %v2324_v58 = vmax.f32 %v2281_v48, 0.0  ;;  %3375 = vmatpush.bf16.msra.mxu0 %v4871_v40  ;;  %3389 = vmatpush.bf16.msra.mxu1 %v4879_v41  ;;  %v4908_v40 = vld [vmem:[%s5517_s6 + $0x1c0] sm:$0xff]  ;;  %v4885_v41 = vld [vmem:[%s5517_s6 + $0x108] sm:$0xff] }
 0x8ab   : > { %v4893_v42 = vld [vmem:[%s5517_s6 + $0x148] sm:$0xff]  ;;  %v4892_v43 = vld [vmem:[%s5517_s6 + $0x140] sm:$0xff] }
 0x8ac   : > { %v2331_v61 = vpack.c.bf16 %v2323_v57, %v2315_v53  ;;  %v2332_v62 = vpack.c.bf16 %v2324_v58, %v2316_v56  ;;  %3346 = vmatpush.bf16.msra.mxu3 %v4856_v51  ;;  %3360 = vmatpush.bf16.msra.mxu2 %v4864_v39 }
 0x8ae   : > { %3376 = vmatpush.bf16.msra.mxu0 %v4870_v59  ;;  %3390 = vmatpush.bf16.msra.mxu1 %v4878_v60 }
 0x8af   : > { %2911 = vmatmul.bf16.vlgmr.msrb.gmra.mxu3 %v2331_v61  ;;  %2925 = vmatmul.bf16.vlgmr.msrb.gmra.mxu2 %v2332_v62 }
 0x8b0   : > { %3347 = vmatpush.bf16.msra.mxu3 %v4855_v63  ;;  %3361 = vmatpush.bf16.msra.mxu2 %v4863_v0 }
 0x8b2   : > { %3377 = vmatpush.bf16.msra.mxu0 %v4869_v1  ;;  %3391 = vmatpush.bf16.msra.mxu1 %v4877_v3 }
 0x8b4   : > { %3348 = vmatpush.bf16.msra.mxu3 %v4854_v4  ;;  %3362 = vmatpush.bf16.msra.mxu2 %v4862_v5 }
 0x8b6   : > { %3378 = vmatpush.bf16.msra.mxu0 %v4868_v6  ;;  %3392 = vmatpush.bf16.msra.mxu1 %v4876_v8 }
 0x8b8   : > { %3349 = vmatpush.bf16.msra.mxu3 %v4853_v11  ;;  %3363 = vmatpush.bf16.msra.mxu2 %v4861_v12 }
 0x8b9   : > { %3379 = vmatmul.bf16.vlgmr.msra.gmra.mxu0 %v5886_v36  ;;  %3393 = vmatmul.bf16.vlgmr.msra.gmra.mxu1 %v5888_v37  ;;  %v4898_v36 = vld [vmem:[%s5517_s6 + $0x170] sm:$0xff]  ;;  %v4904_v37 = vld [vmem:[%s5517_s6 + $0x1a0] sm:$0xff] }
 0x8ba   : > { %3427 = vmatpush.bf16.msrb.mxu0 %v4907_v9  ;;  %3441 = vmatpush.bf16.msrb.mxu1 %v4915_v10 }
 0x8bc   : > { %3350 = vmatpush.bf16.msra.mxu3 %v4852_v16  ;;  %3364 = vmatpush.bf16.msra.mxu2 %v4860_v17 }
 0x8be   : > { %3428 = vmatpush.bf16.msrb.mxu0 %v4906_v7  ;;  %3442 = vmatpush.bf16.msrb.mxu1 %v4914_v15 }
 0x8bf   : > { %3351 = vmatmul.bf16.vlgmr.msra.gmra.mxu3 %v5892_v54  ;;  %3365 = vmatmul.bf16.vlgmr.msra.gmra.mxu2 %v5894_v55  ;;  %v4896_v54 = vld [vmem:[%s5517_s6 + $0x160] sm:$0xff]  ;;  %v4902_v55 = vld [vmem:[%s5517_s6 + $0x190] sm:$0xff]  ;;  %s6216_s6 = sld [smem:[#allocation34_spill]] (!%p4767_p1) }
 0x8c0   : > { %3399 = vmatpush.bf16.msrb.mxu3 %v4891_v18  ;;  %3413 = vmatpush.bf16.msrb.mxu2 %v4899_v2 }
 0x8c2   : > { %3429 = vmatpush.bf16.msrb.mxu0 %v4905_v19  ;;  %3443 = vmatpush.bf16.msrb.mxu1 %v4913_v20 }
 0x8c4   : > { %3400 = vmatpush.bf16.msrb.mxu3 %v4890_v21  ;;  %3414 = vmatpush.bf16.msrb.mxu2 %v4898_v36 }
 0x8c6   : > { %3430 = vmatpush.bf16.msrb.mxu0 %v4904_v37  ;;  %3444 = vmatpush.bf16.msrb.mxu1 %v4912_v23 }
 0x8c8   : > { %3401 = vmatpush.bf16.msrb.mxu3 %v4889_v24  ;;  %3415 = vmatpush.bf16.msrb.mxu2 %v4897_v28 }
 0x8ca   : > { %3431 = vmatpush.bf16.msrb.mxu0 %v4903_v29  ;;  %3445 = vmatpush.bf16.msrb.mxu1 %v4911_v30 }
 0x8cc   : > { %3402 = vmatpush.bf16.msrb.mxu3 %v4888_v31  ;;  %3416 = vmatpush.bf16.msrb.mxu2 %v4896_v54 }
 0x8ce   : > { %3432 = vmatpush.bf16.msrb.mxu0 %v4902_v55  ;;  %3446 = vmatpush.bf16.msrb.mxu1 %v4910_v49 }
 0x8d0   : > { %3403 = vmatpush.bf16.msrb.mxu3 %v4887_v33  ;;  %3417 = vmatpush.bf16.msrb.mxu2 %v4895_v25 }
 0x8d2   : > { %3433 = vmatpush.bf16.msrb.mxu0 %v4901_v52  ;;  %3447 = vmatpush.bf16.msrb.mxu1 %v4909_v50  ;;  %v5105_v50 = vld [vmem:[%s6213_s10] ss:$0 sm:$0xff] }
 0x8d4   : > { %3404 = vmatpush.bf16.msrb.mxu3 %v4886_v35  ;;  %3418 = vmatpush.bf16.msrb.mxu2 %v4894_v22 }
 0x8d6   : > { %3434 = vmatpush.bf16.msrb.mxu0 %v4900_v38  ;;  %3448 = vmatpush.bf16.msrb.mxu1 %v4908_v40 }
 0x8d8   : > { %3405 = vmatpush.bf16.msrb.mxu3 %v4885_v41  ;;  %3419 = vmatpush.bf16.msrb.mxu2 %v4893_v42 }
 0x8d9   : > { %3435 = vmatmul.bf16.vlgmr.msrb.gmra.mxu0 %v5902_v13  ;;  %3449 = vmatmul.bf16.vlgmr.msrb.gmra.mxu1 %v5904_v14 }
 0x8dc   : > { %3406 = vmatpush.bf16.msrb.mxu3 %v4884_v34  ;;  %3420 = vmatpush.bf16.msrb.mxu2 %v4892_v43 }
 0x8df   : > { %3407 = vmatmul.bf16.vlgmr.msrb.gmra.mxu3 %v5909_v26  ;;  %3421 = vmatmul.bf16.vlgmr.msrb.gmra.mxu2 %v5911_v27 }
 0x916   : > { %v2884_v48 = vpop.f32.mrf.mxu0  ;;  %v2898_v51 = vpop.f32.mrf.mxu1 }
 0x91e   : > { %v2886_v56 = vpop.f32.mrf.mxu0  ;;  %v2900_v57 = vpop.f32.mrf.mxu1 }
 0x922   : > { %v2856_v44 = vpop.f32.mrf.mxu3  ;;  %v2870_v45 = vpop.f32.mrf.mxu2 }
 0x923   : > { %v2871_v60 = vadd.f32 %v2870_v45, %v2856_v44 }
 0x925   : > { %v2885_v14 = vadd.f32 %v2884_v48, %v2871_v60 }
 0x926   : > { %v2940_v13 = vpop.f32.mrf.mxu0  ;;  %v2954_v61 = vpop.f32.mrf.mxu1 }
 0x927   : > { %v2899_v63 = vadd.f32 %v2898_v51, %v2885_v14 }
 0x92a   : > { %v2858_v39 = vpop.f32.mrf.mxu3  ;;  %v2872_v53 = vpop.f32.mrf.mxu2 }
 0x92b   : > { %v2873_v62 = vadd.f32 %v2872_v53, %v2858_v39 }
 0x92d   : > { %v2887_v3 = vadd.f32 %v2886_v56, %v2873_v62 }
 0x92e   : > { %v2942_v27 = vpop.f32.mrf.mxu0  ;;  %v2956_v4 = vpop.f32.mrf.mxu1 }
 0x92f   : > { %v2901_v6 = vadd.f32 %v2900_v57, %v2887_v3 }
 0x932   : > { %v2912_v58 = vpop.f32.mrf.mxu3  ;;  %v2926_v59 = vpop.f32.mrf.mxu2 }
 0x933   : > { %v2913_v1 = vadd.f32 %v2912_v58, %v2899_v63 }
 0x935   : > { %v2927_v5 = vadd.f32 %v2926_v59, %v2913_v1 }
 0x936   : > { %v3380_v12 = vpop.f32.mrf.mxu0  ;;  %v3394_v16 = vpop.f32.mrf.mxu1 }
 0x937   : > { %v2941_v8 = vadd.f32 %v2940_v13, %v2927_v5 }
 0x939   : > { %v2955_v15 = vadd.f32 %v2954_v61, %v2941_v8 }
 0x93a   : > { %v2914_v0 = vpop.f32.mrf.mxu3  ;;  %v2928_v26 = vpop.f32.mrf.mxu2 }
 0x93b   : > { %v2915_v9 = vadd.f32 %v2914_v0, %v2901_v6 }
 0x93d   : > { %v2929_v7 = vadd.f32 %v2928_v26, %v2915_v9 }
 0x93e   : > { %v3382_v36 = vpop.f32.mrf.mxu0  ;;  %v3396_v24 = vpop.f32.mrf.mxu1 }
 0x93f   : > { %v2943_v18 = vadd.f32 %v2942_v27, %v2929_v7 }
 0x941   : > { %v2957_v21 = vadd.f32 %v2956_v4, %v2943_v18 }
 0x942   : > { %v3352_v10 = vpop.f32.mrf.mxu3  ;;  %v3366_v11 = vpop.f32.mrf.mxu2 }
 0x943   : > { %v3353_v17 = vadd.f32 %v3352_v10, %v2955_v15  ;;  %v5106_v15 = vld [vmem:[%s1038_s11] ss:$0 sm:$0xff]  ;;  %s6218_s11 = smov (!%p4767_p1), %s6217_s29 }
 0x945   : > { %v3367_v2 = vadd.f32 %v3366_v11, %v3353_v17  ;;  %v5107_v17 = vld [vmem:[%s1041_s1] ss:$0 sm:$0xff]  ;;  %s6214_s1 = sld [smem:[#allocation33_spill]] (!%p4767_p1) }
 0x947   : > { %v3381_v37 = vadd.f32 %v3380_v12, %v3367_v2 }
 0x949   : > { %v3395_v29 = vadd.f32 %v3394_v16, %v3381_v37 }
 0x94a   : > { %v3354_v19 = vpop.f32.mrf.mxu3  ;;  %v3368_v20 = vpop.f32.mrf.mxu2 }
 0x94b   : > { %v3355_v23 = vadd.f32 %v3354_v19, %v2957_v21 }
 0x94d   : > { %v3369_v28 = vadd.f32 %v3368_v20, %v3355_v23 }
 0x94f   : > { %v3383_v49 = vadd.f32 %v3382_v36, %v3369_v28 }
 0x951   : > { %v3397_v22 = vadd.f32 %v3396_v24, %v3383_v49 }
 0x956   : > { %v3436_v55 = vpop.f32.mrf.mxu0  ;;  %v3450_v25 = vpop.f32.mrf.mxu1 }
 0x95e   : > { %v3438_v44 = vpop.f32.mrf.mxu0  ;;  %v3452_v51 = vpop.f32.mrf.mxu1 }
 0x962   : > { %v3408_v30 = vpop.f32.mrf.mxu3  ;;  %v3422_v31 = vpop.f32.mrf.mxu2 }
 0x963   : > { %v3409_v54 = vadd.f32 %v3408_v30, %v3395_v29 }
 0x965   : > { %v3423_v33 = vadd.f32 %v3422_v31, %v3409_v54 }
 0x967   : > { %v3437_v52 = vadd.f32 %v3436_v55, %v3423_v33 }
 0x969   : > { %v3451_v35 = vadd.f32 %v3450_v25, %v3437_v52 }
 0x96a   : > { %v3410_v38 = vpop.f32.mrf.mxu3  ;;  %v3424_v42 = vpop.f32.mrf.mxu2 }
 0x96b   : > { %v3411_v40 = vadd.f32 %v3410_v38, %v3397_v22  ;;  %v3459_v41 = vadd.f32 %v5105_v50, %v3451_v35 }
 0x96d   : > { %v3425_v34 = vadd.f32 %v3424_v42, %v3411_v40  ;;  %v3461_v43 = vadd.f32 %v3459_v41, %v5720_v46 }
 0x96f   : > { %v3439_v45 = vadd.f32 %v3438_v44, %v3425_v34  ;;  %v3465_v48 = vsel %vm1188_vm6, %v3461_v43, 0.0 }
 0x970   : > { %3466 = vadd.xlane.f32.xlu2 %v3465_v48 }
 0x971   : > { %v3453_v39 = vadd.f32 %v3452_v51, %v3439_v45 }
 0x973   : > { %v3460_v53 = vadd.f32 %v5105_v50, %v3453_v39 }
 0x975   : > { %v3462_v56 = vadd.f32 %v3460_v53, %v5722_v47 }
 0x977   : > { %v3468_v57 = vsel %vm1188_vm6, %v3462_v56, 0.0 }
 0x978   : > { %3469 = vadd.xlane.f32.xlu1 %v3468_v57 }
 0x9e3   : > { %v3467_v58 = vpop.xlane.xlu2 %3466 }
 0x9e4   : > { %v3471_v59 = vmul.f32 %v3467_v58, %v5618_v32 }
 0x9e6   : > { %v3473_v60 = vsub.f32 %v3461_v43, %v3471_v59 }
 0x9e8   : > { %v3475_v13 = vmul.f32 %v3473_v60, %v3473_v60 }
 0x9ea   : > { %v3477_v46 = vsel %vm1188_vm6, %v3475_v13, 0.0 }
 0x9eb   : > { %v3470_v61 = vpop.xlane.xlu1 %3469  ;;  %3478 = vadd.xlane.f32.xlu2 %v3477_v46 }
 0x9ec   : > { %v3472_v14 = vmul.f32 %v3470_v61, %v5618_v32 }
 0x9ee   : > { %v3474_v62 = vsub.f32 %v3462_v56, %v3472_v14 }
 0x9f0   : > { %v3476_v63 = vmul.f32 %v3474_v62, %v3474_v62 }
 0x9f2   : > { %v3480_v0 = vsel %vm1188_vm6, %v3476_v63, 0.0 }
 0x9f3   : > { %3481 = vadd.xlane.f32.xlu1 %v3480_v0 }
 0xa5e   : > { %v3479_v47 = vpop.xlane.xlu2 %3478 }
 0xa5f   : > { %v3483_v26 = vmul.f32 %v3479_v47, %v5618_v32 }
 0xa61   : > { %v3485_v1 = vadd.f32 1e-05, %v3483_v26 }
 0xa63   : > { %5130 = vrsqrt.f32 %v3485_v1  ;;  %vm3493_vm1 = vweird.f32 %v3485_v1 }
 0xa66   : > { %v3482_v27 = vpop.xlane.xlu1 %3481 }
 0xa67   : > { %v3484_v3 = vmul.f32 %v3482_v27, %v5618_v32 }
 0xa69   : > { %v5131_v4 = vpop.eup %5130  ;;  %v3486_v5 = vadd.f32 1e-05, %v3484_v3 }
 0xa6a   : > { %v3488_v6 = vmul.f32 %v5131_v4, %v3485_v1  ;;  %vm3494_vm0 = vweird.f32 %v5131_v4 }
 0xa6b   : > { %5132 = vrsqrt.f32 %v3486_v5  ;;  %vm3495_vm2 = vmor %vm3493_vm1, %vm3494_vm0  ;;  %vm3503_vm4 = vweird.f32 %v3486_v5 }
 0xa6c   : > { %v3489_v8 = vmul.f32 %v5131_v4, %v3488_v6 }
 0xa6e   : > { %v3490_v9 = vmul.f32 0.5, %v3489_v8 }
 0xa70   : > { %v3491_v10 = vsub.f32 1.5, %v3490_v9 }
 0xa71   : > { %v5133_v11 = vpop.eup %5132 }
 0xa72   : > { %v3492_v12 = vmul.f32 %v5131_v4, %v3491_v10  ;;  %v3498_v7 = vmul.f32 %v5133_v11, %v3486_v5  ;;  %vm3504_vm3 = vweird.f32 %v5133_v11 }
 0xa73   : > { %vm3505_vm5 = vmor %vm3503_vm4, %vm3504_vm3 }
 0xa74   : > { %v3496_v32 = vsel %vm3495_vm2, %v5131_v4, %v3492_v12  ;;  %v3499_v16 = vmul.f32 %v5133_v11, %v3498_v7 }
 0xa75   : > { %v3507_v18 = vmul.f32 %v3496_v32, %v3473_v60 }
 0xa76   : > { %v3500_v2 = vmul.f32 0.5, %v3499_v16 }
 0xa77   : > { %v3512_v19 = vmul.f32 %v5106_v15, %v3507_v18 }
 0xa78   : > { %v3501_v20 = vsub.f32 1.5, %v3500_v2 }
 0xa79   : > { %v3517_v21 = vadd.f32 %v5107_v17, %v3512_v19 }
 0xa7a   : > { %v3502_v36 = vmul.f32 %v5133_v11, %v3501_v20 }
 0xa7b   : > { %3519 = vst.msk [vmem:[#allocation2] sm:$0xff] %vm1188_vm6, %v3517_v21 }
 0xa7c   : > { %v3506_v37 = vsel %vm3505_vm5, %v5133_v11, %v3502_v36 }
 0xa7d   : > { %v3508_v23 = vmul.f32 %v3506_v37, %v3474_v62 }
 0xa7f   : > { %v3513_v24 = vmul.f32 %v5106_v15, %v3508_v23  ;;  %3524 = sbr.rel (%p4767_p1) target bundleno = 3264 (0xcc0), region = 136 }
 0xa81   : > { %v3518_v28 = vadd.f32 %v5107_v17, %v3513_v24 }
 0xa83   : > { %3520 = vst.msk [vmem:[#allocation2 + $0x8] sm:$0xff] %vm1188_vm6, %v3518_v28 }
 0xa84   : > { %v5015_v29 = vld [vmem:[%s6214_s1 + $0x18] sm:$0xff]  ;;  %v5014_v30 = vld [vmem:[%s6214_s1 + $0x10] sm:$0xff]  ;;  %v5013_v31 = vld [vmem:[%s6214_s1 + $0x8] sm:$0xff]  ;;  %v3525_v55 = vpack.c.bf16 %v3518_v28, %v3517_v21  ;;  %v5237_v43 = vmov 0   ;;  %vm3666_vm9 = vcmask 1045504   ;;  %vm3683_vm11 = vcmask 57344  }
 0xa85   : > { %3569 = vmatpush.bf16.msra.mxu0 %v5015_v29  ;;  %v5012_v54 = vld [vmem:[%s6214_s1] sm:$0xff]  ;;  %v5017_v49 = vld [vmem:[%s6215_s7 + $0x8] sm:$0xff]  ;;  %5134 = vset.pattern.permute.xlu0 %v5237_v43  ;;  %v5136_v44 = vld [vmem:[#allocation3] ss:$0 sm:$0xff] }
 0xa86   : > { %3615 = vmatpush.bf16.msra.mxu1 %v5017_v49  ;;  %v5016_v33 = vld [vmem:[%s6215_s7] sm:$0xff] }
 0xa87   : > { %v5135_v52 = vld [vmem:[%s6216_s6] ss:$0 sm:$0xff]  ;;  %v5018_v56 = vld [vmem:[%s6218_s11] sm:$0x30] }
 0xa88   : > { %v4796_v53 = vld [vmem:[%s6217_s29] sm:$0xf] }
 0xa89   : > { %3570 = vmatpush.bf16.msra.mxu0 %v5014_v30  ;;  %v4797_v57 = vor.u32 %v5018_v56, %v4796_v53  ;;  %v5020_v59 = vld [vmem:[%s6219_s3] sm:$0xff]  }
 0xa8a   : > { %3616 = vmatpush.bf16.msra.mxu1 %v5016_v33  ;;  %v5021_v13 = vunpack.c.l.bf16 %v5020_v59  ;;  %v5022_v46 = vunpack.c.h.bf16 %v5020_v59  ;;  %v3649_v5 = vld [vmem:[%s6220_s5] sm:$0x1] }
 0xa8b   : > { %v3668_v58 = vsel %vm3666_vm9, %v4797_v57, 0  ;;  %v3657_v12 = vld [vmem:[%s6221_s19] sm:$0x1] }
 0xa8c   : > { %3677 = vmatpush.bf16.msra.mxu2 %v3668_v58 }
 0xa8d   : > { %3571 = vmatpush.bf16.msra.mxu0 %v5013_v31 }
 0xa91   : > { %3572 = vmatpush.bf16.msra.mxu0 %v5012_v54 }
 0xa94   : > { %4784 = vmatmul.msk.bf16.vlgmr.msra.gmra.mxu0 %vm1188_vm6, %v3525_v55 }
 0xb11   : > { %v3574_v25 = vpop.f32.mrf.mxu0 }
 0xb12   : > { %v3575_v50 = vadd.f32 %v5135_v52, %v3574_v25 }
 0xb14   : > { %v3581_v22 = vmul.f32 0.01, %v3575_v50  ;;  %vm3579_vm6 = vcmp.ge.f32.partialorder %v3575_v50, 0.0 }
 0xb16   : > { %v3583_v41 = vsel %vm3579_vm6, %v3575_v50, %v3581_v22 }
 0xb19   : > { %v3576_v35 = vpop.f32.mrf.mxu0 }
 0xb1a   : > { %v3577_v38 = vadd.f32 %v5135_v52, %v3576_v35 }
 0xb1c   : > { %v3582_v40 = vmul.f32 0.01, %v3577_v38  ;;  %vm3580_vm8 = vcmp.ge.f32.partialorder %v3577_v38, 0.0 }
 0xb1e   : > { %v3584_v42 = vsel %vm3580_vm8, %v3577_v38, %v3582_v40 }
 0xb1f   : > { %v3585_v34 = vpack.c.bf16 %v3584_v42, %v3583_v41 }
 0xb21   : > { %4793 = vmatmul.msk.bf16.vlgmr.msra.gmra.mxu1 %vm1229_vm7, %v3585_v34  ;;  %vm3639_vm7 = vcmask 97280  }
 0xb9e   : > { %v3618_v45 = vpop.f32.mrf.mxu1 }
 0xb9f   : > { %v3619_v48 = vadd.f32 %v5136_v44, %v3618_v45 }
 0xba1   : > { %3629 = vperm.xlu0 %5134, %v3619_v48  }
 0xba6   : > { %v3620_v51 = vpop.f32.mrf.mxu1 }
 0xba7   : > { %v3621_v39 = vadd.f32 %v5136_v44, %v3620_v51 }
 0xba9   : > { %3634 = vperm.xlu0 %5134, %v3621_v39  }
 0xc13   : > { %v3630_v60 = vpop.permute.xlu0 %3629 }
 0xc14   : > { %v3637_v61 = vmul.f32 %v5021_v13, %v3630_v60 }
 0xc16   : > { %v3640_v63 = vsel %vm3639_vm7, %v3637_v61, 0.0 }
 0xc1b   : > { %v3635_v14 = vpop.permute.xlu0 %3634 }
 0xc1c   : > { %v3638_v62 = vmul.f32 %v5022_v46, %v3635_v14 }
 0xc1e   : > { %v3641_v0 = vsel %vm3639_vm7, %v3638_v62, 0.0 }
 0xc1f   : > { %v3642_v47 = vadd.f32 %v3641_v0, %v3640_v63 }
 0xc21   : > { %v3643_v26 = vrot.slane %v3642_v47, 4 }
 0xc23   : > { %v3644_v1 = vadd.f32 %v3643_v26, %v3642_v47 }
 0xc25   : > { %v3645_v27 = vrot.slane %v3644_v1, 2 }
 0xc27   : > { %v3646_v3 = vadd.f32 %v3645_v27, %v3644_v1 }
 0xc29   : > { %v3647_v4 = vrot.slane %v3646_v3, 1 }
 0xc2b   : > { %v3648_v6 = vadd.f32 %v3647_v4, %v3646_v3 }
 0xc2d   : > { %v3650_v8 = vadd.f32 %v3649_v5, %v3648_v6 }
 0xc2f   : > { %vm3651_vm10 = vcmp.ge.f32.partialorder %v3650_v8, 0.0  ;;  %v3652_v9 = vmul.f32 0.01, %v3650_v8 }
 0xc31   : > { %v3653_v10 = vsel %vm3651_vm10, %v3650_v8, %v3652_v9 }
 0xc32   : > { %v3654_v11 = vpack.c.bf16 %v3653_v10, %v3653_v10 }
 0xc34   : > { %4798 = vmatmul.msk.bf16.vlgmr.msra.gmra.mxu2 %vm3639_vm7, %v3654_v11 }
 0xcb7   : > { %v3679_v7 = vpop.f32.mrf.mxu2 }
 0xcb8   : > { %v3680_v15 = vadd.f32 %v3679_v7, %v3657_v12 }
 0xcba   : > { %3684 = vst.msk [vmem:[%s5529_s9] sm:$0x1] %vm3683_vm11, %v3680_v15 }
 0xcbf   : > { %v3681_v32 = vpop.f32.mrf.mxu2 }
 0xcc0 PF: > { %s6222_s4 = sld [smem:[#allocation9_spill]]  ;;  %s3696_s0 = sshll.u32 %s5529_s9, 4  ;;  %s3697_s0 = int_to_ptr.vmem [resolvable:$true] %s3696_s0 }
 0xcc1   : > { %s6223_s22 = sld [smem:[#allocation40_spill]]  ;;  %s6225_s21 = sand.u32 1, %s5207_s30  }
 0xcc2   : > { %s3686_s25 = scalar_lea.sflag [#allocation5], %s6225_s21 }
 0xcc7   : > { %s3694_s29 = scalar_lea.hbm %s6223_s22, %s6222_s4  ;;  %s5157_s8 = scalar_lea.hbm %s6223_s22, 2 }
 0xcc8   : > { %s3698_s20 = sshll.u32 %s3694_s29, 4  ;;  %s3699_s20 = int_to_ptr.hbm [resolvable:$true] %s3698_s20 }
 0xcc9   : > { %s5151_s3 = sshra.s32 %s3699_s20, 4  ;;  %s5152_s3 = int_to_ptr.hbm [resolvable:$true] %s5151_s3 }
 0xcca   : > { %s5153_s2 = scalar_lea.hbm %s5152_s3, 1  ;;  %p5158_p6 = scmp.lt.s32.totalorder %s5152_s3, %s6223_s22 }
 0xccb   : > { %p5154_p2 = scmp.ne.s32.totalorder %s5152_s3, %s5153_s2  ;;  %p5159_p7 = scmp.lt.s32.totalorder %s5157_s8, %s5153_s2 }
 0xccd   : > { %p5155_p4 = pnand %p5154_p2, %p5430_p3  ;;  %p5160_p8 = por %p5159_p7, %p5158_p6 }
 0xccf   : > { %p5156_p5 = pneg %p5155_p4 }
 0xcd1   : > { %p5161_p10 = pnand %p5160_p8, %p5156_p5 }
 0xcd3   : > { %5164 = shalt.err (!%p5161_p10)
}
 0xcd4   : > { %5023 = dma.vmem_to_hbm [thread:$0]  (%p5430_p3), %s3697_s0, 16, %s3699_s20, %s3686_s25  }
 0xcd5 PF: > { %s6226_s9 = sld [smem:[#allocation12_spill]] }
 0xcd6   : > { %s6227_s4 = sld [smem:[#allocation7_spill]] }
 0xcdb   : > { %p5029_p11 = scmp.ge.s32.totalorder %s6226_s9, 2 }
 0xcdc   : > { %s3710_s6 = sand.u32 1, %s6227_s4  }
 0xcdd   : > { %p5026_p12 = pnand %p5029_p11, %p5440_p9  ;;  %s3711_s29 = scalar_lea.sflag [#allocation5], %s3710_s6 }
 0xcdf   : > { %p5027_p13 = pneg %p5026_p12 }
 0xce1   : > { %5198 = dma.done.wait (%p5027_p13), %s3711_s29, 16  }
 0xce2   : > { %5200 = vsyncadd (%p5027_p13), %s3711_s29, 4294967280  ;;  %s42_s29 = sadd.s32 1, %s6226_s9   ;;  %s6229_s21 = sld [smem:[#allocation8_spill]] }
 0xce3   : > { %p39_p0 = scmp.ge.s32.totalorder %s42_s29, 6   ;;  %s6230_s9 = sld [smem:[#allocation17_spill]] }
 0xce4   : > { %s6231_s5 = sld [smem:[#allocation10_spill]]  ;;  %s6235_s8 = smov %s5207_s30 }
 0xce5   : > { %s6232_s28 = sld [smem:[#allocation11_spill]]  ;;  %41 = sbr.rel (!%p39_p0) target bundleno = 26 (0x1a), region = 210 }
 0xce6   : > { %s6233_s0 = sld [smem:[#allocation13_spill]] }
 0xce7   : > { %s6234_s10 = sld [smem:[#allocation15_spill]] }
 0xce8   : > { %s6236_s30 = smov %s6229_s21 }
 0xcea   :  { %3716 = vsyncpa [#allocation5], 1 }
 0xceb   :  { %3718 = vsyncpa [#allocation5 + $0x1], 1 }

</bundles_post_ra>
